<compile_context>
chip_gen: v7x
topology: tpu7x:2x2x1
jax: 0.10.0
libtpu: 0.0.40
codegen_flags: <defaults>
</compile_context>

<pallas_src>
import math

import jax
import jax.numpy as jnp
from jax.experimental import pallas as pl
from jax.experimental.pallas import tpu as pltpu

# Module constants (from LSTM_version1.py)
HIDDEN_SIZE = 128
INPUT_SIZE = 128
TIME_LAG = 10
IN_FEATURES = 64   # linear_in: 64 -> INPUT_SIZE, linear_out: HIDDEN_SIZE -> 64
OUT_PAD = 128      # lane-dense output width (sliced back to 64 in the wrapper)
SUBLANE = 8


def meannet_kernel(x_ref, w_in_ref, b_in_ref, w_ih_ref, b_gates_ref,
                   w_hh_ref, b_hh_n_ref, w_out_ref, b_out_ref,
                   out_ref, gates_ref):
    """Whole forward pass, fully VMEM-resident (weights ~0.25 MiB in bf16).

    x_ref is time-major, flattened and bf16: (T * Bp, 64), Bp a multiple of 8.
    Weights arrive transposed ((in, out)) as bf16; biases are (1, N) f32.
    b_gates = b_ih + [b_hh_r | b_hh_z | 0] (folded host-side); b_hh_n separate.
    gates_ref is a (T*Bp, 3H) f32 VMEM scratch for the precomputed gate inputs.
    """
    H = HIDDEN_SIZE
    Bp = out_ref.shape[0]
    T = x_ref.shape[0] // Bp

    # ---- Input-side path, hoisted out of the recurrence (batched matmuls) ----
    # z = linear_in(x) for every (t, b) row at once.
    z = jnp.dot(x_ref[...], w_in_ref[...],
                preferred_element_type=jnp.float32) + b_in_ref[...]   # (T*Bp, 128)

    if T > TIME_LAG:
        # Spec: z[:, t, :] is only written for t < TIME_LAG; later slots stay 0.
        row_t = jax.lax.broadcasted_iota(jnp.int32, z.shape, 0) // Bp
        z = jnp.where(row_t < TIME_LAG, z, 0.0)

    # gi = z @ W_ih + (b_ih + b_hh[r|z] folded), also hoisted.  Stage in VMEM
    # scratch so the serial loop only keeps one (Bp, 3H) slab live at a time.
    gates_ref[...] = jnp.dot(z.astype(jnp.bfloat16), w_ih_ref[...],
                             preferred_element_type=jnp.float32) + b_gates_ref[...]

    w_hh = w_hh_ref[...]          # (128, 384) bf16, gate order [r | z | n]
    b_hh_n = b_hh_n_ref[...]      # (1, 128)   f32

    # ---- Serial GRU recurrence: one h @ W_hh matmul + gate math per step ----
    h = jnp.zeros((Bp, H), jnp.float32)           # GRU h_0 = zeros (rnn(z, None))
    for t in range(T):                            # T == TIME_LAG (small): unroll
        g = gates_ref[pl.ds(t * Bp, Bp), :]                               # (Bp, 384)
        gh = jnp.dot(h.astype(jnp.bfloat16), w_hh,
                     preferred_element_type=jnp.float32)                  # (Bp, 384)
        r = jax.nn.sigmoid(g[:, :H] + gh[:, :H])
        zg = jax.nn.sigmoid(g[:, H:2 * H] + gh[:, H:2 * H])
        n = jnp.tanh(g[:, 2 * H:] + r * (gh[:, 2 * H:] + b_hh_n))
        h = (1.0 - zg) * n + zg * h

    # out = linear_out(r_out[:, -1, :])  (last hidden state of single-layer GRU)
    out = jnp.dot(h.astype(jnp.bfloat16), w_out_ref[...],
                  preferred_element_type=jnp.float32) + b_out_ref[...]
    out_ref[...] = out


def meannet_forward(x, params):
    B, T, F = x.shape
    assert F == IN_FEATURES
    assert T >= TIME_LAG
    H = HIDDEN_SIZE
    # Pad batch to a multiple of 8 sublanes so gate math / stores are unmasked.
    Bp = ((B + SUBLANE - 1) // SUBLANE) * SUBLANE

    # Time-major, flattened, bf16 layout: each timestep is a sublane-aligned slab.
    x_p = jnp.pad(x, ((0, Bp - B), (0, 0), (0, 0)))
    x_tm = jnp.transpose(x_p, (1, 0, 2)).reshape(T * Bp, IN_FEATURES)
    x_tm = x_tm.astype(jnp.bfloat16)

    # Fold b_hh's r/z parts into the precomputed gate bias (host-side, tiny).
    b_hh = params["b_hh"]
    b_gates = params["b_ih"] + jnp.concatenate(
        [b_hh[:, :2 * H], jnp.zeros_like(b_hh[:, 2 * H:])], axis=1)
    b_hh_n = b_hh[:, 2 * H:]

    # Pad the output projection to 128 lanes -> unmasked lane-dense final store.
    w_out_p = jnp.pad(params["w_out"],
                      ((0, 0), (0, OUT_PAD - IN_FEATURES))).astype(jnp.bfloat16)
    b_out_p = jnp.pad(params["b_out"], ((0, 0), (0, OUT_PAD - IN_FEATURES)))

    args = (
        x_tm,
        params["w_in"].astype(jnp.bfloat16), params["b_in"],
        params["w_ih"].astype(jnp.bfloat16), b_gates,
        params["w_hh"].astype(jnp.bfloat16), b_hh_n,
        w_out_p, b_out_p,
    )
    out_p = pl.pallas_call(
        meannet_kernel,
        out_shape=jax.ShapeDtypeStruct((Bp, OUT_PAD), jnp.float32),
        in_specs=[pl.BlockSpec(memory_space=pltpu.MemorySpace.VMEM)] * len(args),
        out_specs=pl.BlockSpec(memory_space=pltpu.MemorySpace.VMEM),
        scratch_shapes=[pltpu.VMEM((T * Bp, 3 * H), jnp.float32)],
    )(*args)
    # TODO(synk): for large B, add a 1-D "parallel" grid over batch tiles so the
    # second TensorCore on v7x is used and x / gate tiles are double-buffered.
    return out_p[:B, :IN_FEATURES]


def init_params(key):
    """Deterministic init mirroring PyTorch default shapes (stored transposed)."""
    ks = jax.random.split(key, 8)

    def uniform(k, shape, fan_in):
        bound = 1.0 / math.sqrt(fan_in)
        return jax.random.uniform(k, shape, jnp.float32, -bound, bound)

    return {
        # linear_in: nn.Linear(64, INPUT_SIZE)
        "w_in": uniform(ks[0], (IN_FEATURES, INPUT_SIZE), IN_FEATURES),
        "b_in": uniform(ks[1], (1, INPUT_SIZE), IN_FEATURES),
        # GRU(input_size=INPUT_SIZE, hidden_size=HIDDEN_SIZE, num_layers=1)
        "w_ih": uniform(ks[2], (INPUT_SIZE, 3 * HIDDEN_SIZE), HIDDEN_SIZE),
        "b_ih": uniform(ks[3], (1, 3 * HIDDEN_SIZE), HIDDEN_SIZE),
        "w_hh": uniform(ks[4], (HIDDEN_SIZE, 3 * HIDDEN_SIZE), HIDDEN_SIZE),
        "b_hh": uniform(ks[5], (1, 3 * HIDDEN_SIZE), HIDDEN_SIZE),
        # linear_out: nn.Linear(HIDDEN_SIZE, 64)
        "w_out": uniform(ks[6], (HIDDEN_SIZE, IN_FEATURES), HIDDEN_SIZE),
        "b_out": uniform(ks[7], (1, IN_FEATURES), HIDDEN_SIZE),
    }


if __name__ == "__main__":
    key = jax.random.PRNGKey(0)
    k_x, k_p = jax.random.split(key)

    B, T = 2, TIME_LAG                       # seq length == TIME_LAG, as in training use
    x = jax.random.normal(k_x, (B, T, IN_FEATURES), jnp.float32)
    params = init_params(k_p)

    out = meannet_forward(x, params)
    out = jax.block_until_ready(out)

    assert out.shape == (B, IN_FEATURES) and out.dtype == jnp.float32
    assert bool(jnp.all(jnp.isfinite(out)))
    print("KERNEL_OK")
</pallas_src>

<mosaic_0001>
module attributes {stable_mosaic.version = 11 : i64} {
  func.func @meannet_kernel(%arg0: memref<80x64xbf16, #tpu.memory_space<vmem>>, %arg1: memref<64x128xbf16, #tpu.memory_space<vmem>>, %arg2: memref<1x128xf32, #tpu.memory_space<vmem>>, %arg3: memref<128x384xbf16, #tpu.memory_space<vmem>>, %arg4: memref<1x384xf32, #tpu.memory_space<vmem>>, %arg5: memref<128x384xbf16, #tpu.memory_space<vmem>>, %arg6: memref<1x128xf32, #tpu.memory_space<vmem>>, %arg7: memref<128x128xbf16, #tpu.memory_space<vmem>>, %arg8: memref<1x128xf32, #tpu.memory_space<vmem>>, %arg9: memref<8x128xf32, #tpu.memory_space<vmem>>, %arg10: memref<80x384xf32, #tpu.memory_space<vmem>>) attributes {dimension_semantics = [], scalar_prefetch = 0 : i64, scratch_operands = 1 : i64, tpu.core_type = #tpu.core_type<tc>} {
    %c0 = arith.constant 0 : index
    %c0_0 = arith.constant 0 : index
    %0 = vector.load %arg0[%c0, %c0_0] : memref<80x64xbf16, #tpu.memory_space<vmem>>, vector<80x64xbf16>
    %c0_1 = arith.constant 0 : index
    %c0_2 = arith.constant 0 : index
    %1 = vector.load %arg1[%c0_1, %c0_2] : memref<64x128xbf16, #tpu.memory_space<vmem>>, vector<64x128xbf16>
    %cst = arith.constant dense<0.000000e+00> : vector<80x128xf32>
    %2 = tpu.matmul %0, %1, %cst {dimension_numbers = #tpu.dot_dimension_numbers<[1], [0], [0], [1], [0, 0, 1, 1], [], []>} : vector<80x64xbf16>, vector<64x128xbf16>, vector<80x128xf32> -> vector<80x128xf32>
    %c0_3 = arith.constant 0 : index
    %c0_4 = arith.constant 0 : index
    %3 = vector.load %arg2[%c0_3, %c0_4] : memref<1x128xf32, #tpu.memory_space<vmem>>, vector<1x128xf32>
    %4 = vector.broadcast %3 : vector<1x128xf32> to vector<80x128xf32>
    %5 = arith.addf %2, %4 : vector<80x128xf32>
    %6 = arith.truncf %5 : vector<80x128xf32> to vector<80x128xbf16>
    %c0_5 = arith.constant 0 : index
    %c0_6 = arith.constant 0 : index
    %7 = vector.load %arg3[%c0_5, %c0_6] : memref<128x384xbf16, #tpu.memory_space<vmem>>, vector<128x384xbf16>
    %cst_7 = arith.constant dense<0.000000e+00> : vector<80x384xf32>
    %8 = tpu.matmul %6, %7, %cst_7 {dimension_numbers = #tpu.dot_dimension_numbers<[1], [0], [0], [1], [0, 0, 1, 1], [], []>} : vector<80x128xbf16>, vector<128x384xbf16>, vector<80x384xf32> -> vector<80x384xf32>
    %c0_8 = arith.constant 0 : index
    %c0_9 = arith.constant 0 : index
    %9 = vector.load %arg4[%c0_8, %c0_9] : memref<1x384xf32, #tpu.memory_space<vmem>>, vector<1x384xf32>
    %10 = vector.broadcast %9 : vector<1x384xf32> to vector<80x384xf32>
    %11 = arith.addf %8, %10 : vector<80x384xf32>
    %c0_10 = arith.constant 0 : index
    %c0_11 = arith.constant 0 : index
    %12 = vector.load %arg10[%c0_10, %c0_11] : memref<80x384xf32, #tpu.memory_space<vmem>>, vector<80x384xf32>
    tpu.vector_store %arg10[%c0_10, %c0_11], %11 {strides = array<i32>} : memref<80x384xf32, #tpu.memory_space<vmem>>, vector<80x384xf32>,
    %c0_12 = arith.constant 0 : index
    %c0_13 = arith.constant 0 : index
    %13 = vector.load %arg5[%c0_12, %c0_13] : memref<128x384xbf16, #tpu.memory_space<vmem>>, vector<128x384xbf16>
    %c0_14 = arith.constant 0 : index
    %c0_15 = arith.constant 0 : index
    %14 = vector.load %arg6[%c0_14, %c0_15] : memref<1x128xf32, #tpu.memory_space<vmem>>, vector<1x128xf32>
    %cst_16 = arith.constant 0.000000e+00 : f32
    %15 = vector.broadcast %cst_16 : f32 to vector<8x128xf32>
    %c0_17 = arith.constant 0 : index
    %c0_18 = arith.constant 0 : index
    %16 = vector.load %arg10[%c0_17, %c0_18] : memref<80x384xf32, #tpu.memory_space<vmem>>, vector<8x384xf32>
    %17 = arith.truncf %15 : vector<8x128xf32> to vector<8x128xbf16>
    %cst_19 = arith.constant dense<0.000000e+00> : vector<8x384xf32>
    %18 = tpu.matmul %17, %13, %cst_19 {dimension_numbers = #tpu.dot_dimension_numbers<[1], [0], [0], [1], [0, 0, 1, 1], [], []>} : vector<8x128xbf16>, vector<128x384xbf16>, vector<8x384xf32> -> vector<8x384xf32>
    %19 = vector.extract_strided_slice %16 {offsets = [0, 0], sizes = [8, 128], strides = [1, 1]} : vector<8x384xf32> to vector<8x128xf32>
    %20 = vector.extract_strided_slice %18 {offsets = [0, 0], sizes = [8, 128], strides = [1, 1]} : vector<8x384xf32> to vector<8x128xf32>
    %21 = arith.addf %19, %20 : vector<8x128xf32>
    %22 = arith.negf %21 : vector<8x128xf32>
    %23 = math.exp %22 : vector<8x128xf32>
    %cst_20 = arith.constant 1.000000e+00 : f32
    %24 = vector.broadcast %cst_20 : f32 to vector<8x128xf32>
    %25 = arith.addf %24, %23 : vector<8x128xf32>
    %26 = arith.divf %24, %25 : vector<8x128xf32>
    %27 = vector.extract_strided_slice %16 {offsets = [0, 128], sizes = [8, 128], strides = [1, 1]} : vector<8x384xf32> to vector<8x128xf32>
    %28 = vector.extract_strided_slice %18 {offsets = [0, 128], sizes = [8, 128], strides = [1, 1]} : vector<8x384xf32> to vector<8x128xf32>
    %29 = arith.addf %27, %28 : vector<8x128xf32>
    %30 = arith.negf %29 : vector<8x128xf32>
    %31 = math.exp %30 : vector<8x128xf32>
    %cst_21 = arith.constant 1.000000e+00 : f32
    %32 = vector.broadcast %cst_21 : f32 to vector<8x128xf32>
    %33 = arith.addf %32, %31 : vector<8x128xf32>
    %34 = arith.divf %32, %33 : vector<8x128xf32>
    %35 = vector.extract_strided_slice %16 {offsets = [0, 256], sizes = [8, 128], strides = [1, 1]} : vector<8x384xf32> to vector<8x128xf32>
    %36 = vector.extract_strided_slice %18 {offsets = [0, 256], sizes = [8, 128], strides = [1, 1]} : vector<8x384xf32> to vector<8x128xf32>
    %37 = vector.broadcast %14 : vector<1x128xf32> to vector<8x128xf32>
    %38 = arith.addf %36, %37 : vector<8x128xf32>
    %39 = arith.mulf %26, %38 : vector<8x128xf32>
    %40 = arith.addf %35, %39 : vector<8x128xf32>
    %41 = math.tanh %40 : vector<8x128xf32>
    %cst_22 = arith.constant 1.000000e+00 : f32
    %42 = vector.broadcast %cst_22 : f32 to vector<8x128xf32>
    %43 = arith.subf %42, %34 : vector<8x128xf32>
    %44 = arith.mulf %43, %41 : vector<8x128xf32>
    %45 = arith.mulf %34, %15 : vector<8x128xf32>
    %46 = arith.addf %44, %45 : vector<8x128xf32>
    %c8 = arith.constant 8 : index
    %c0_23 = arith.constant 0 : index
    %47 = vector.load %arg10[%c8, %c0_23] : memref<80x384xf32, #tpu.memory_space<vmem>>, vector<8x384xf32>
    %48 = arith.truncf %46 : vector<8x128xf32> to vector<8x128xbf16>
    %cst_24 = arith.constant dense<0.000000e+00> : vector<8x384xf32>
    %49 = tpu.matmul %48, %13, %cst_24 {dimension_numbers = #tpu.dot_dimension_numbers<[1], [0], [0], [1], [0, 0, 1, 1], [], []>} : vector<8x128xbf16>, vector<128x384xbf16>, vector<8x384xf32> -> vector<8x384xf32>
    %50 = vector.extract_strided_slice %47 {offsets = [0, 0], sizes = [8, 128], strides = [1, 1]} : vector<8x384xf32> to vector<8x128xf32>
    %51 = vector.extract_strided_slice %49 {offsets = [0, 0], sizes = [8, 128], strides = [1, 1]} : vector<8x384xf32> to vector<8x128xf32>
    %52 = arith.addf %50, %51 : vector<8x128xf32>
    %53 = arith.negf %52 : vector<8x128xf32>
    %54 = math.exp %53 : vector<8x128xf32>
    %cst_25 = arith.constant 1.000000e+00 : f32
    %55 = vector.broadcast %cst_25 : f32 to vector<8x128xf32>
    %56 = arith.addf %55, %54 : vector<8x128xf32>
    %57 = arith.divf %55, %56 : vector<8x128xf32>
    %58 = vector.extract_strided_slice %47 {offsets = [0, 128], sizes = [8, 128], strides = [1, 1]} : vector<8x384xf32> to vector<8x128xf32>
    %59 = vector.extract_strided_slice %49 {offsets = [0, 128], sizes = [8, 128], strides = [1, 1]} : vector<8x384xf32> to vector<8x128xf32>
    %60 = arith.addf %58, %59 : vector<8x128xf32>
    %61 = arith.negf %60 : vector<8x128xf32>
    %62 = math.exp %61 : vector<8x128xf32>
    %cst_26 = arith.constant 1.000000e+00 : f32
    %63 = vector.broadcast %cst_26 : f32 to vector<8x128xf32>
    %64 = arith.addf %63, %62 : vector<8x128xf32>
    %65 = arith.divf %63, %64 : vector<8x128xf32>
    %66 = vector.extract_strided_slice %47 {offsets = [0, 256], sizes = [8, 128], strides = [1, 1]} : vector<8x384xf32> to vector<8x128xf32>
    %67 = vector.extract_strided_slice %49 {offsets = [0, 256], sizes = [8, 128], strides = [1, 1]} : vector<8x384xf32> to vector<8x128xf32>
    %68 = vector.broadcast %14 : vector<1x128xf32> to vector<8x128xf32>
    %69 = arith.addf %67, %68 : vector<8x128xf32>
    %70 = arith.mulf %57, %69 : vector<8x128xf32>
    %71 = arith.addf %66, %70 : vector<8x128xf32>
    %72 = math.tanh %71 : vector<8x128xf32>
    %cst_27 = arith.constant 1.000000e+00 : f32
    %73 = vector.broadcast %cst_27 : f32 to vector<8x128xf32>
    %74 = arith.subf %73, %65 : vector<8x128xf32>
    %75 = arith.mulf %74, %72 : vector<8x128xf32>
    %76 = arith.mulf %65, %46 : vector<8x128xf32>
    %77 = arith.addf %75, %76 : vector<8x128xf32>
    %c16 = arith.constant 16 : index
    %c0_28 = arith.constant 0 : index
    %78 = vector.load %arg10[%c16, %c0_28] : memref<80x384xf32, #tpu.memory_space<vmem>>, vector<8x384xf32>
    %79 = arith.truncf %77 : vector<8x128xf32> to vector<8x128xbf16>
    %cst_29 = arith.constant dense<0.000000e+00> : vector<8x384xf32>
    %80 = tpu.matmul %79, %13, %cst_29 {dimension_numbers = #tpu.dot_dimension_numbers<[1], [0], [0], [1], [0, 0, 1, 1], [], []>} : vector<8x128xbf16>, vector<128x384xbf16>, vector<8x384xf32> -> vector<8x384xf32>
    %81 = vector.extract_strided_slice %78 {offsets = [0, 0], sizes = [8, 128], strides = [1, 1]} : vector<8x384xf32> to vector<8x128xf32>
    %82 = vector.extract_strided_slice %80 {offsets = [0, 0], sizes = [8, 128], strides = [1, 1]} : vector<8x384xf32> to vector<8x128xf32>
    %83 = arith.addf %81, %82 : vector<8x128xf32>
    %84 = arith.negf %83 : vector<8x128xf32>
    %85 = math.exp %84 : vector<8x128xf32>
    %cst_30 = arith.constant 1.000000e+00 : f32
    %86 = vector.broadcast %cst_30 : f32 to vector<8x128xf32>
    %87 = arith.addf %86, %85 : vector<8x128xf32>
    %88 = arith.divf %86, %87 : vector<8x128xf32>
    %89 = vector.extract_strided_slice %78 {offsets = [0, 128], sizes = [8, 128], strides = [1, 1]} : vector<8x384xf32> to vector<8x128xf32>
    %90 = vector.extract_strided_slice %80 {offsets = [0, 128], sizes = [8, 128], strides = [1, 1]} : vector<8x384xf32> to vector<8x128xf32>
    %91 = arith.addf %89, %90 : vector<8x128xf32>
    %92 = arith.negf %91 : vector<8x128xf32>
    %93 = math.exp %92 : vector<8x128xf32>
    %cst_31 = arith.constant 1.000000e+00 : f32
    %94 = vector.broadcast %cst_31 : f32 to vector<8x128xf32>
    %95 = arith.addf %94, %93 : vector<8x128xf32>
    %96 = arith.divf %94, %95 : vector<8x128xf32>
    %97 = vector.extract_strided_slice %78 {offsets = [0, 256], sizes = [8, 128], strides = [1, 1]} : vector<8x384xf32> to vector<8x128xf32>
    %98 = vector.extract_strided_slice %80 {offsets = [0, 256], sizes = [8, 128], strides = [1, 1]} : vector<8x384xf32> to vector<8x128xf32>
    %99 = vector.broadcast %14 : vector<1x128xf32> to vector<8x128xf32>
    %100 = arith.addf %98, %99 : vector<8x128xf32>
    %101 = arith.mulf %88, %100 : vector<8x128xf32>
    %102 = arith.addf %97, %101 : vector<8x128xf32>
    %103 = math.tanh %102 : vector<8x128xf32>
    %cst_32 = arith.constant 1.000000e+00 : f32
    %104 = vector.broadcast %cst_32 : f32 to vector<8x128xf32>
    %105 = arith.subf %104, %96 : vector<8x128xf32>
    %106 = arith.mulf %105, %103 : vector<8x128xf32>
    %107 = arith.mulf %96, %77 : vector<8x128xf32>
    %108 = arith.addf %106, %107 : vector<8x128xf32>
    %c24 = arith.constant 24 : index
    %c0_33 = arith.constant 0 : index
    %109 = vector.load %arg10[%c24, %c0_33] : memref<80x384xf32, #tpu.memory_space<vmem>>, vector<8x384xf32>
    %110 = arith.truncf %108 : vector<8x128xf32> to vector<8x128xbf16>
    %cst_34 = arith.constant dense<0.000000e+00> : vector<8x384xf32>
    %111 = tpu.matmul %110, %13, %cst_34 {dimension_numbers = #tpu.dot_dimension_numbers<[1], [0], [0], [1], [0, 0, 1, 1], [], []>} : vector<8x128xbf16>, vector<128x384xbf16>, vector<8x384xf32> -> vector<8x384xf32>
    %112 = vector.extract_strided_slice %109 {offsets = [0, 0], sizes = [8, 128], strides = [1, 1]} : vector<8x384xf32> to vector<8x128xf32>
    %113 = vector.extract_strided_slice %111 {offsets = [0, 0], sizes = [8, 128], strides = [1, 1]} : vector<8x384xf32> to vector<8x128xf32>
    %114 = arith.addf %112, %113 : vector<8x128xf32>
    %115 = arith.negf %114 : vector<8x128xf32>
    %116 = math.exp %115 : vector<8x128xf32>
    %cst_35 = arith.constant 1.000000e+00 : f32
    %117 = vector.broadcast %cst_35 : f32 to vector<8x128xf32>
    %118 = arith.addf %117, %116 : vector<8x128xf32>
    %119 = arith.divf %117, %118 : vector<8x128xf32>
    %120 = vector.extract_strided_slice %109 {offsets = [0, 128], sizes = [8, 128], strides = [1, 1]} : vector<8x384xf32> to vector<8x128xf32>
    %121 = vector.extract_strided_slice %111 {offsets = [0, 128], sizes = [8, 128], strides = [1, 1]} : vector<8x384xf32> to vector<8x128xf32>
    %122 = arith.addf %120, %121 : vector<8x128xf32>
    %123 = arith.negf %122 : vector<8x128xf32>
    %124 = math.exp %123 : vector<8x128xf32>
    %cst_36 = arith.constant 1.000000e+00 : f32
    %125 = vector.broadcast %cst_36 : f32 to vector<8x128xf32>
    %126 = arith.addf %125, %124 : vector<8x128xf32>
    %127 = arith.divf %125, %126 : vector<8x128xf32>
    %128 = vector.extract_strided_slice %109 {offsets = [0, 256], sizes = [8, 128], strides = [1, 1]} : vector<8x384xf32> to vector<8x128xf32>
    %129 = vector.extract_strided_slice %111 {offsets = [0, 256], sizes = [8, 128], strides = [1, 1]} : vector<8x384xf32> to vector<8x128xf32>
    %130 = vector.broadcast %14 : vector<1x128xf32> to vector<8x128xf32>
    %131 = arith.addf %129, %130 : vector<8x128xf32>
    %132 = arith.mulf %119, %131 : vector<8x128xf32>
    %133 = arith.addf %128, %132 : vector<8x128xf32>
    %134 = math.tanh %133 : vector<8x128xf32>
    %cst_37 = arith.constant 1.000000e+00 : f32
    %135 = vector.broadcast %cst_37 : f32 to vector<8x128xf32>
    %136 = arith.subf %135, %127 : vector<8x128xf32>
    %137 = arith.mulf %136, %134 : vector<8x128xf32>
    %138 = arith.mulf %127, %108 : vector<8x128xf32>
    %139 = arith.addf %137, %138 : vector<8x128xf32>
    %c32 = arith.constant 32 : index
    %c0_38 = arith.constant 0 : index
    %140 = vector.load %arg10[%c32, %c0_38] : memref<80x384xf32, #tpu.memory_space<vmem>>, vector<8x384xf32>
    %141 = arith.truncf %139 : vector<8x128xf32> to vector<8x128xbf16>
    %cst_39 = arith.constant dense<0.000000e+00> : vector<8x384xf32>
    %142 = tpu.matmul %141, %13, %cst_39 {dimension_numbers = #tpu.dot_dimension_numbers<[1], [0], [0], [1], [0, 0, 1, 1], [], []>} : vector<8x128xbf16>, vector<128x384xbf16>, vector<8x384xf32> -> vector<8x384xf32>
    %143 = vector.extract_strided_slice %140 {offsets = [0, 0], sizes = [8, 128], strides = [1, 1]} : vector<8x384xf32> to vector<8x128xf32>
    %144 = vector.extract_strided_slice %142 {offsets = [0, 0], sizes = [8, 128], strides = [1, 1]} : vector<8x384xf32> to vector<8x128xf32>
    %145 = arith.addf %143, %144 : vector<8x128xf32>
    %146 = arith.negf %145 : vector<8x128xf32>
    %147 = math.exp %146 : vector<8x128xf32>
    %cst_40 = arith.constant 1.000000e+00 : f32
    %148 = vector.broadcast %cst_40 : f32 to vector<8x128xf32>
    %149 = arith.addf %148, %147 : vector<8x128xf32>
    %150 = arith.divf %148, %149 : vector<8x128xf32>
    %151 = vector.extract_strided_slice %140 {offsets = [0, 128], sizes = [8, 128], strides = [1, 1]} : vector<8x384xf32> to vector<8x128xf32>
    %152 = vector.extract_strided_slice %142 {offsets = [0, 128], sizes = [8, 128], strides = [1, 1]} : vector<8x384xf32> to vector<8x128xf32>
    %153 = arith.addf %151, %152 : vector<8x128xf32>
    %154 = arith.negf %153 : vector<8x128xf32>
    %155 = math.exp %154 : vector<8x128xf32>
    %cst_41 = arith.constant 1.000000e+00 : f32
    %156 = vector.broadcast %cst_41 : f32 to vector<8x128xf32>
    %157 = arith.addf %156, %155 : vector<8x128xf32>
    %158 = arith.divf %156, %157 : vector<8x128xf32>
    %159 = vector.extract_strided_slice %140 {offsets = [0, 256], sizes = [8, 128], strides = [1, 1]} : vector<8x384xf32> to vector<8x128xf32>
    %160 = vector.extract_strided_slice %142 {offsets = [0, 256], sizes = [8, 128], strides = [1, 1]} : vector<8x384xf32> to vector<8x128xf32>
    %161 = vector.broadcast %14 : vector<1x128xf32> to vector<8x128xf32>
    %162 = arith.addf %160, %161 : vector<8x128xf32>
    %163 = arith.mulf %150, %162 : vector<8x128xf32>
    %164 = arith.addf %159, %163 : vector<8x128xf32>
    %165 = math.tanh %164 : vector<8x128xf32>
    %cst_42 = arith.constant 1.000000e+00 : f32
    %166 = vector.broadcast %cst_42 : f32 to vector<8x128xf32>
    %167 = arith.subf %166, %158 : vector<8x128xf32>
    %168 = arith.mulf %167, %165 : vector<8x128xf32>
    %169 = arith.mulf %158, %139 : vector<8x128xf32>
    %170 = arith.addf %168, %169 : vector<8x128xf32>
    %c40 = arith.constant 40 : index
    %c0_43 = arith.constant 0 : index
    %171 = vector.load %arg10[%c40, %c0_43] : memref<80x384xf32, #tpu.memory_space<vmem>>, vector<8x384xf32>
    %172 = arith.truncf %170 : vector<8x128xf32> to vector<8x128xbf16>
    %cst_44 = arith.constant dense<0.000000e+00> : vector<8x384xf32>
    %173 = tpu.matmul %172, %13, %cst_44 {dimension_numbers = #tpu.dot_dimension_numbers<[1], [0], [0], [1], [0, 0, 1, 1], [], []>} : vector<8x128xbf16>, vector<128x384xbf16>, vector<8x384xf32> -> vector<8x384xf32>
    %174 = vector.extract_strided_slice %171 {offsets = [0, 0], sizes = [8, 128], strides = [1, 1]} : vector<8x384xf32> to vector<8x128xf32>
    %175 = vector.extract_strided_slice %173 {offsets = [0, 0], sizes = [8, 128], strides = [1, 1]} : vector<8x384xf32> to vector<8x128xf32>
    %176 = arith.addf %174, %175 : vector<8x128xf32>
    %177 = arith.negf %176 : vector<8x128xf32>
    %178 = math.exp %177 : vector<8x128xf32>
    %cst_45 = arith.constant 1.000000e+00 : f32
    %179 = vector.broadcast %cst_45 : f32 to vector<8x128xf32>
    %180 = arith.addf %179, %178 : vector<8x128xf32>
    %181 = arith.divf %179, %180 : vector<8x128xf32>
    %182 = vector.extract_strided_slice %171 {offsets = [0, 128], sizes = [8, 128], strides = [1, 1]} : vector<8x384xf32> to vector<8x128xf32>
    %183 = vector.extract_strided_slice %173 {offsets = [0, 128], sizes = [8, 128], strides = [1, 1]} : vector<8x384xf32> to vector<8x128xf32>
    %184 = arith.addf %182, %183 : vector<8x128xf32>
    %185 = arith.negf %184 : vector<8x128xf32>
    %186 = math.exp %185 : vector<8x128xf32>
    %cst_46 = arith.constant 1.000000e+00 : f32
    %187 = vector.broadcast %cst_46 : f32 to vector<8x128xf32>
    %188 = arith.addf %187, %186 : vector<8x128xf32>
    %189 = arith.divf %187, %188 : vector<8x128xf32>
    %190 = vector.extract_strided_slice %171 {offsets = [0, 256], sizes = [8, 128], strides = [1, 1]} : vector<8x384xf32> to vector<8x128xf32>
    %191 = vector.extract_strided_slice %173 {offsets = [0, 256], sizes = [8, 128], strides = [1, 1]} : vector<8x384xf32> to vector<8x128xf32>
    %192 = vector.broadcast %14 : vector<1x128xf32> to vector<8x128xf32>
    %193 = arith.addf %191, %192 : vector<8x128xf32>
    %194 = arith.mulf %181, %193 : vector<8x128xf32>
    %195 = arith.addf %190, %194 : vector<8x128xf32>
    %196 = math.tanh %195 : vector<8x128xf32>
    %cst_47 = arith.constant 1.000000e+00 : f32
    %197 = vector.broadcast %cst_47 : f32 to vector<8x128xf32>
    %198 = arith.subf %197, %189 : vector<8x128xf32>
    %199 = arith.mulf %198, %196 : vector<8x128xf32>
    %200 = arith.mulf %189, %170 : vector<8x128xf32>
    %201 = arith.addf %199, %200 : vector<8x128xf32>
    %c48 = arith.constant 48 : index
    %c0_48 = arith.constant 0 : index
    %202 = vector.load %arg10[%c48, %c0_48] : memref<80x384xf32, #tpu.memory_space<vmem>>, vector<8x384xf32>
    %203 = arith.truncf %201 : vector<8x128xf32> to vector<8x128xbf16>
    %cst_49 = arith.constant dense<0.000000e+00> : vector<8x384xf32>
    %204 = tpu.matmul %203, %13, %cst_49 {dimension_numbers = #tpu.dot_dimension_numbers<[1], [0], [0], [1], [0, 0, 1, 1], [], []>} : vector<8x128xbf16>, vector<128x384xbf16>, vector<8x384xf32> -> vector<8x384xf32>
    %205 = vector.extract_strided_slice %202 {offsets = [0, 0], sizes = [8, 128], strides = [1, 1]} : vector<8x384xf32> to vector<8x128xf32>
    %206 = vector.extract_strided_slice %204 {offsets = [0, 0], sizes = [8, 128], strides = [1, 1]} : vector<8x384xf32> to vector<8x128xf32>
    %207 = arith.addf %205, %206 : vector<8x128xf32>
    %208 = arith.negf %207 : vector<8x128xf32>
    %209 = math.exp %208 : vector<8x128xf32>
    %cst_50 = arith.constant 1.000000e+00 : f32
    %210 = vector.broadcast %cst_50 : f32 to vector<8x128xf32>
    %211 = arith.addf %210, %209 : vector<8x128xf32>
    %212 = arith.divf %210, %211 : vector<8x128xf32>
    %213 = vector.extract_strided_slice %202 {offsets = [0, 128], sizes = [8, 128], strides = [1, 1]} : vector<8x384xf32> to vector<8x128xf32>
    %214 = vector.extract_strided_slice %204 {offsets = [0, 128], sizes = [8, 128], strides = [1, 1]} : vector<8x384xf32> to vector<8x128xf32>
    %215 = arith.addf %213, %214 : vector<8x128xf32>
    %216 = arith.negf %215 : vector<8x128xf32>
    %217 = math.exp %216 : vector<8x128xf32>
    %cst_51 = arith.constant 1.000000e+00 : f32
    %218 = vector.broadcast %cst_51 : f32 to vector<8x128xf32>
    %219 = arith.addf %218, %217 : vector<8x128xf32>
    %220 = arith.divf %218, %219 : vector<8x128xf32>
    %221 = vector.extract_strided_slice %202 {offsets = [0, 256], sizes = [8, 128], strides = [1, 1]} : vector<8x384xf32> to vector<8x128xf32>
    %222 = vector.extract_strided_slice %204 {offsets = [0, 256], sizes = [8, 128], strides = [1, 1]} : vector<8x384xf32> to vector<8x128xf32>
    %223 = vector.broadcast %14 : vector<1x128xf32> to vector<8x128xf32>
    %224 = arith.addf %222, %223 : vector<8x128xf32>
    %225 = arith.mulf %212, %224 : vector<8x128xf32>
    %226 = arith.addf %221, %225 : vector<8x128xf32>
    %227 = math.tanh %226 : vector<8x128xf32>
    %cst_52 = arith.constant 1.000000e+00 : f32
    %228 = vector.broadcast %cst_52 : f32 to vector<8x128xf32>
    %229 = arith.subf %228, %220 : vector<8x128xf32>
    %230 = arith.mulf %229, %227 : vector<8x128xf32>
    %231 = arith.mulf %220, %201 : vector<8x128xf32>
    %232 = arith.addf %230, %231 : vector<8x128xf32>
    %c56 = arith.constant 56 : index
    %c0_53 = arith.constant 0 : index
    %233 = vector.load %arg10[%c56, %c0_53] : memref<80x384xf32, #tpu.memory_space<vmem>>, vector<8x384xf32>
    %234 = arith.truncf %232 : vector<8x128xf32> to vector<8x128xbf16>
    %cst_54 = arith.constant dense<0.000000e+00> : vector<8x384xf32>
    %235 = tpu.matmul %234, %13, %cst_54 {dimension_numbers = #tpu.dot_dimension_numbers<[1], [0], [0], [1], [0, 0, 1, 1], [], []>} : vector<8x128xbf16>, vector<128x384xbf16>, vector<8x384xf32> -> vector<8x384xf32>
    %236 = vector.extract_strided_slice %233 {offsets = [0, 0], sizes = [8, 128], strides = [1, 1]} : vector<8x384xf32> to vector<8x128xf32>
    %237 = vector.extract_strided_slice %235 {offsets = [0, 0], sizes = [8, 128], strides = [1, 1]} : vector<8x384xf32> to vector<8x128xf32>
    %238 = arith.addf %236, %237 : vector<8x128xf32>
    %239 = arith.negf %238 : vector<8x128xf32>
    %240 = math.exp %239 : vector<8x128xf32>
    %cst_55 = arith.constant 1.000000e+00 : f32
    %241 = vector.broadcast %cst_55 : f32 to vector<8x128xf32>
    %242 = arith.addf %241, %240 : vector<8x128xf32>
    %243 = arith.divf %241, %242 : vector<8x128xf32>
    %244 = vector.extract_strided_slice %233 {offsets = [0, 128], sizes = [8, 128], strides = [1, 1]} : vector<8x384xf32> to vector<8x128xf32>
    %245 = vector.extract_strided_slice %235 {offsets = [0, 128], sizes = [8, 128], strides = [1, 1]} : vector<8x384xf32> to vector<8x128xf32>
    %246 = arith.addf %244, %245 : vector<8x128xf32>
    %247 = arith.negf %246 : vector<8x128xf32>
    %248 = math.exp %247 : vector<8x128xf32>
    %cst_56 = arith.constant 1.000000e+00 : f32
    %249 = vector.broadcast %cst_56 : f32 to vector<8x128xf32>
    %250 = arith.addf %249, %248 : vector<8x128xf32>
    %251 = arith.divf %249, %250 : vector<8x128xf32>
    %252 = vector.extract_strided_slice %233 {offsets = [0, 256], sizes = [8, 128], strides = [1, 1]} : vector<8x384xf32> to vector<8x128xf32>
    %253 = vector.extract_strided_slice %235 {offsets = [0, 256], sizes = [8, 128], strides = [1, 1]} : vector<8x384xf32> to vector<8x128xf32>
    %254 = vector.broadcast %14 : vector<1x128xf32> to vector<8x128xf32>
    %255 = arith.addf %253, %254 : vector<8x128xf32>
    %256 = arith.mulf %243, %255 : vector<8x128xf32>
    %257 = arith.addf %252, %256 : vector<8x128xf32>
    %258 = math.tanh %257 : vector<8x128xf32>
    %cst_57 = arith.constant 1.000000e+00 : f32
    %259 = vector.broadcast %cst_57 : f32 to vector<8x128xf32>
    %260 = arith.subf %259, %251 : vector<8x128xf32>
    %261 = arith.mulf %260, %258 : vector<8x128xf32>
    %262 = arith.mulf %251, %232 : vector<8x128xf32>
    %263 = arith.addf %261, %262 : vector<8x128xf32>
    %c64 = arith.constant 64 : index
    %c0_58 = arith.constant 0 : index
    %264 = vector.load %arg10[%c64, %c0_58] : memref<80x384xf32, #tpu.memory_space<vmem>>, vector<8x384xf32>
    %265 = arith.truncf %263 : vector<8x128xf32> to vector<8x128xbf16>
    %cst_59 = arith.constant dense<0.000000e+00> : vector<8x384xf32>
    %266 = tpu.matmul %265, %13, %cst_59 {dimension_numbers = #tpu.dot_dimension_numbers<[1], [0], [0], [1], [0, 0, 1, 1], [], []>} : vector<8x128xbf16>, vector<128x384xbf16>, vector<8x384xf32> -> vector<8x384xf32>
    %267 = vector.extract_strided_slice %264 {offsets = [0, 0], sizes = [8, 128], strides = [1, 1]} : vector<8x384xf32> to vector<8x128xf32>
    %268 = vector.extract_strided_slice %266 {offsets = [0, 0], sizes = [8, 128], strides = [1, 1]} : vector<8x384xf32> to vector<8x128xf32>
    %269 = arith.addf %267, %268 : vector<8x128xf32>
    %270 = arith.negf %269 : vector<8x128xf32>
    %271 = math.exp %270 : vector<8x128xf32>
    %cst_60 = arith.constant 1.000000e+00 : f32
    %272 = vector.broadcast %cst_60 : f32 to vector<8x128xf32>
    %273 = arith.addf %272, %271 : vector<8x128xf32>
    %274 = arith.divf %272, %273 : vector<8x128xf32>
    %275 = vector.extract_strided_slice %264 {offsets = [0, 128], sizes = [8, 128], strides = [1, 1]} : vector<8x384xf32> to vector<8x128xf32>
    %276 = vector.extract_strided_slice %266 {offsets = [0, 128], sizes = [8, 128], strides = [1, 1]} : vector<8x384xf32> to vector<8x128xf32>
    %277 = arith.addf %275, %276 : vector<8x128xf32>
    %278 = arith.negf %277 : vector<8x128xf32>
    %279 = math.exp %278 : vector<8x128xf32>
    %cst_61 = arith.constant 1.000000e+00 : f32
    %280 = vector.broadcast %cst_61 : f32 to vector<8x128xf32>
    %281 = arith.addf %280, %279 : vector<8x128xf32>
    %282 = arith.divf %280, %281 : vector<8x128xf32>
    %283 = vector.extract_strided_slice %264 {offsets = [0, 256], sizes = [8, 128], strides = [1, 1]} : vector<8x384xf32> to vector<8x128xf32>
    %284 = vector.extract_strided_slice %266 {offsets = [0, 256], sizes = [8, 128], strides = [1, 1]} : vector<8x384xf32> to vector<8x128xf32>
    %285 = vector.broadcast %14 : vector<1x128xf32> to vector<8x128xf32>
    %286 = arith.addf %284, %285 : vector<8x128xf32>
    %287 = arith.mulf %274, %286 : vector<8x128xf32>
    %288 = arith.addf %283, %287 : vector<8x128xf32>
    %289 = math.tanh %288 : vector<8x128xf32>
    %cst_62 = arith.constant 1.000000e+00 : f32
    %290 = vector.broadcast %cst_62 : f32 to vector<8x128xf32>
    %291 = arith.subf %290, %282 : vector<8x128xf32>
    %292 = arith.mulf %291, %289 : vector<8x128xf32>
    %293 = arith.mulf %282, %263 : vector<8x128xf32>
    %294 = arith.addf %292, %293 : vector<8x128xf32>
    %c72 = arith.constant 72 : index
    %c0_63 = arith.constant 0 : index
    %295 = vector.load %arg10[%c72, %c0_63] : memref<80x384xf32, #tpu.memory_space<vmem>>, vector<8x384xf32>
    %296 = arith.truncf %294 : vector<8x128xf32> to vector<8x128xbf16>
    %cst_64 = arith.constant dense<0.000000e+00> : vector<8x384xf32>
    %297 = tpu.matmul %296, %13, %cst_64 {dimension_numbers = #tpu.dot_dimension_numbers<[1], [0], [0], [1], [0, 0, 1, 1], [], []>} : vector<8x128xbf16>, vector<128x384xbf16>, vector<8x384xf32> -> vector<8x384xf32>
    %298 = vector.extract_strided_slice %295 {offsets = [0, 0], sizes = [8, 128], strides = [1, 1]} : vector<8x384xf32> to vector<8x128xf32>
    %299 = vector.extract_strided_slice %297 {offsets = [0, 0], sizes = [8, 128], strides = [1, 1]} : vector<8x384xf32> to vector<8x128xf32>
    %300 = arith.addf %298, %299 : vector<8x128xf32>
    %301 = arith.negf %300 : vector<8x128xf32>
    %302 = math.exp %301 : vector<8x128xf32>
    %cst_65 = arith.constant 1.000000e+00 : f32
    %303 = vector.broadcast %cst_65 : f32 to vector<8x128xf32>
    %304 = arith.addf %303, %302 : vector<8x128xf32>
    %305 = arith.divf %303, %304 : vector<8x128xf32>
    %306 = vector.extract_strided_slice %295 {offsets = [0, 128], sizes = [8, 128], strides = [1, 1]} : vector<8x384xf32> to vector<8x128xf32>
    %307 = vector.extract_strided_slice %297 {offsets = [0, 128], sizes = [8, 128], strides = [1, 1]} : vector<8x384xf32> to vector<8x128xf32>
    %308 = arith.addf %306, %307 : vector<8x128xf32>
    %309 = arith.negf %308 : vector<8x128xf32>
    %310 = math.exp %309 : vector<8x128xf32>
    %cst_66 = arith.constant 1.000000e+00 : f32
    %311 = vector.broadcast %cst_66 : f32 to vector<8x128xf32>
    %312 = arith.addf %311, %310 : vector<8x128xf32>
    %313 = arith.divf %311, %312 : vector<8x128xf32>
    %314 = vector.extract_strided_slice %295 {offsets = [0, 256], sizes = [8, 128], strides = [1, 1]} : vector<8x384xf32> to vector<8x128xf32>
    %315 = vector.extract_strided_slice %297 {offsets = [0, 256], sizes = [8, 128], strides = [1, 1]} : vector<8x384xf32> to vector<8x128xf32>
    %316 = vector.broadcast %14 : vector<1x128xf32> to vector<8x128xf32>
    %317 = arith.addf %315, %316 : vector<8x128xf32>
    %318 = arith.mulf %305, %317 : vector<8x128xf32>
    %319 = arith.addf %314, %318 : vector<8x128xf32>
    %320 = math.tanh %319 : vector<8x128xf32>
    %cst_67 = arith.constant 1.000000e+00 : f32
    %321 = vector.broadcast %cst_67 : f32 to vector<8x128xf32>
    %322 = arith.subf %321, %313 : vector<8x128xf32>
    %323 = arith.mulf %322, %320 : vector<8x128xf32>
    %324 = arith.mulf %313, %294 : vector<8x128xf32>
    %325 = arith.addf %323, %324 : vector<8x128xf32>
    %326 = arith.truncf %325 : vector<8x128xf32> to vector<8x128xbf16>
    %c0_68 = arith.constant 0 : index
    %c0_69 = arith.constant 0 : index
    %327 = vector.load %arg7[%c0_68, %c0_69] : memref<128x128xbf16, #tpu.memory_space<vmem>>, vector<128x128xbf16>
    %cst_70 = arith.constant dense<0.000000e+00> : vector<8x128xf32>
    %328 = tpu.matmul %326, %327, %cst_70 {dimension_numbers = #tpu.dot_dimension_numbers<[1], [0], [0], [1], [0, 0, 1, 1], [], []>} : vector<8x128xbf16>, vector<128x128xbf16>, vector<8x128xf32> -> vector<8x128xf32>
    %c0_71 = arith.constant 0 : index
    %c0_72 = arith.constant 0 : index
    %329 = vector.load %arg8[%c0_71, %c0_72] : memref<1x128xf32, #tpu.memory_space<vmem>>, vector<1x128xf32>
    %330 = vector.broadcast %329 : vector<1x128xf32> to vector<8x128xf32>
    %331 = arith.addf %328, %330 : vector<8x128xf32>
    %c0_73 = arith.constant 0 : index
    %c0_74 = arith.constant 0 : index
    %332 = vector.load %arg9[%c0_73, %c0_74] : memref<8x128xf32, #tpu.memory_space<vmem>>, vector<8x128xf32>
    tpu.vector_store %arg9[%c0_73, %c0_74], %331 {strides = array<i32>} : memref<8x128xf32, #tpu.memory_space<vmem>>, vector<8x128xf32>,
    return
  }
}

</mosaic_0001>

<bundles_post_ra>
// kernel: tpu_custom_call.1
= control target key start
LH: loop header
LB: loop body
LE: loop exit
PB: predicated region body
PF: predicated region fallthrough
CT: control target
= control target key end

     0   :  { %14 = vsyncpa [#allocation4], 0  ;;  %s3641_s0 = inlined_call_operand.vmem [shape: bf16[80,64], index: 0, kind: input, shape index: {}]   ;;  %s3642_s1 = inlined_call_operand.vmem [shape: bf16[64,128], index: 1, kind: input, shape index: {}]   ;;  %s3643_s2 = inlined_call_operand.vmem [shape: f32[1,128], index: 2, kind: input, shape index: {}]   ;;  %s3644_s3 = inlined_call_operand.hbm [shape: bf16[128,384], index: 3, kind: input, shape index: {}]   ;;  %s3645_s4 = inlined_call_operand.hbm [shape: f32[1,384], index: 4, kind: input, shape index: {}]   ;;  %s3646_s5 = inlined_call_operand.hbm [shape: bf16[128,384], index: 5, kind: input, shape index: {}]   ;;  %s3647_s6 = inlined_call_operand.vmem [shape: f32[1,128], index: 6, kind: input, shape index: {}]   ;;  %s3648_s7 = inlined_call_operand.vmem [shape: bf16[128,128], index: 7, kind: input, shape index: {}]   ;;  %s3649_s8 = inlined_call_operand.vmem [shape: f32[1,128], index: 8, kind: input, shape index: {}]   ;;  %s3650_s9 = inlined_call_operand.hbm [shape: f32[8,128], index: 9, kind: output, shape index: {}]  }
   0x1   :  { %15 = vsyncpa [#allocation7], 0 }
   0x2   :  { %16 = vsyncpa [#allocation5], 0  ;;  %s2776_s30 = smov [#allocation6]   ;;  %s2777_s11 = smov [#allocation3]  }
   0x3   :  { %s41_s10 = sshll.u32 %s2776_s30, 4  ;;  %s28_s12 = sshll.u32 %s2777_s11, 4  ;;  %s42_s10 = int_to_ptr.vmem [resolvable:$true] %s41_s10  ;;  %s2835_s12 = int_to_ptr.vmem [resolvable:$true] %s28_s12 }
   0x4   :  { %s2682_s15 = scalar_lea.hbm %s3645_s4, 48 }
   0x5   :  { %p2683_p0 = scmp.ne.s32.totalorder %s3645_s4, %s2682_s15  ;;  %p2686_p1 = scmp.lt.u32.totalorder %s2682_s15, %s3645_s4 }
   0x7   :  { %p2688_p2 = pnand %p2686_p1, %p2683_p0 }
   0x9   :  { %2691 = shalt.err (!%p2688_p2)
}
   0xa   :  { %s2692_s20 = scalar_lea.vmem %s42_s10, 48  ;;  %s2696_s21 = scalar_lea.vmem %s42_s10, 64 }
   0xb   :  { %p2693_p3 = scmp.ne.s32.totalorder %s42_s10, %s2692_s20  ;;  %p2697_p4 = scmp.lt.s32.totalorder %s42_s10, %s42_s10 }
   0xc   :  { %p2698_p5 = scmp.lt.s32.totalorder %s2696_s21, %s2692_s20 }
   0xe   :  { %p2699_p6 = por %p2698_p5, %p2697_p4 }
  0x10   :  { %p2700_p7 = pnand %p2699_p6, %p2693_p3 }
  0x12   :  { %2703 = shalt.err (!%p2700_p7)
}
  0x13   :  { %44 = dma.hbm_to_vmem [thread:$0]  %s3645_s4, 48, %s42_s10, [#allocation7]  }
  0x14   :  { %s2704_s26 = scalar_lea.hbm %s3644_s3, 3072 }
  0x15   :  { %p2705_p8 = scmp.ne.s32.totalorder %s3644_s3, %s2704_s26  ;;  %p2708_p9 = scmp.lt.u32.totalorder %s2704_s26, %s3644_s3 }
  0x17   :  { %p2710_p10 = pnand %p2708_p9, %p2705_p8 }
  0x19   :  { %2713 = shalt.err (!%p2710_p10)
}
  0x1a   :  { %s2714_s11 = scalar_lea.vmem %s2835_s12, 3072  ;;  %p2719_p12 = scmp.lt.s32.totalorder %s2835_s12, %s2835_s12 }
  0x1b   :  { %p2715_p11 = scmp.ne.s32.totalorder %s2835_s12, %s2714_s11  ;;  %p2720_p13 = scmp.lt.s32.totalorder %s2714_s11, %s2714_s11 }
  0x1d   :  { %p2721_p0 = por %p2720_p13, %p2719_p12 }
  0x1f   :  { %p2722_p1 = pnand %p2721_p0, %p2715_p11 }
  0x21   :  { %2725 = shalt.err (!%p2722_p1)
}
  0x22   :  { %s2778_s4 = smov 192   ;;  %s2779_s10 = smov 12  }
  0x23   :  { %34 = dma.hbm_to_vmem [thread:$0]  %s3644_s3, 3072, %s2835_s12, [#allocation4], %s2778_s4, %s2778_s4, %s2779_s10  }
  0x24   :  { %s2780_s15 = smov [#allocation8]   ;;  %s2726_s19 = scalar_lea.hbm %s3646_s5, 3072 }
  0x25   :  { %s50_s16 = sshll.u32 %s2780_s15, 4  ;;  %p2727_p2 = scmp.ne.s32.totalorder %s3646_s5, %s2726_s19  ;;  %s51_s16 = int_to_ptr.vmem [resolvable:$true] %s50_s16 }
  0x26   :  { %p2730_p3 = scmp.lt.u32.totalorder %s2726_s19, %s3646_s5 }
  0x28   :  { %p2732_p4 = pnand %p2730_p3, %p2727_p2 }
  0x2a   :  { %2735 = shalt.err (!%p2732_p4)
}
  0x2b   :  { %s2736_s24 = scalar_lea.vmem %s51_s16, 3072  ;;  %p2741_p6 = scmp.lt.s32.totalorder %s51_s16, %s51_s16 }
  0x2c   :  { %p2737_p5 = scmp.ne.s32.totalorder %s51_s16, %s2736_s24  ;;  %p2742_p7 = scmp.lt.s32.totalorder %s2736_s24, %s2736_s24 }
  0x2e   :  { %p2743_p8 = por %p2742_p7, %p2741_p6 }
  0x30   :  { %p2744_p9 = pnand %p2743_p8, %p2737_p5 }
  0x32   :  { %2747 = shalt.err (!%p2744_p9)
}
  0x33   :  { %56 = dma.hbm_to_vmem [thread:$0]  %s3646_s5, 3072, %s51_s16, [#allocation7], %s2778_s4, %s2778_s4, %s2779_s10  }
  0x34   :  { %2770 = dma.done.wait [#allocation4], 3072  }
  0x35   :  { %2771 = vsyncadd [#allocation4], 4294964224 }
  0x36   :  { %2772 = dma.done.wait [#allocation7], 3120  }
  0x37   :  { %2773 = vsyncadd [#allocation7], 4294964176  ;;  %v3653_v0 = vmov 0.0   ;;  %vm2782_vm0 = vmmov 0   ;;  %v2476_v1 = vld [vmem:[%s3642_s1] sm:$0xff]   ;;  %v2477_v2 = vld [vmem:[%s3642_s1 + $0x8] sm:$0xff]  }
  0x38   :  { %2183 = vmatprep.subr.bf16.mxu0 %v3653_v0  ;;  %2191 = vmatprep.mubr.msk.bf16.mxu0 %vm2782_vm0, %v3653_v0  ;;  %v2478_v3 = vld [vmem:[%s3642_s1 + $0x10] sm:$0xff]   ;;  %v2479_v4 = vld [vmem:[%s3642_s1 + $0x18] sm:$0xff]   ;;  %v2491_v8 = vld [vmem:[#allocation3 + $0x18] ss:$12 sps:$4 sm:$0xff]   ;;  %vm147_vm1 = vcmask 523264   ;;  %v3651_v35 = vmov 0  }
  0x39   :  { %2184 = vmatpush3.bf16.msra.mxu0 %v2476_v1  ;;  %v2485_v5 = vld [vmem:[#allocation3 + $0x4] ss:$12 sps:$4 sm:$0xff]   ;;  %v2487_v6 = vld [vmem:[#allocation3] ss:$12 sps:$4 sm:$0xff]   ;;  %v2489_v7 = vld [vmem:[#allocation3 + $0x1c] ss:$12 sps:$4 sm:$0xff]   ;;  %450 = vmatprep.mubr.bf16.mxu1 %v3651_v35 }
  0x3a   :  { %2185 = vmatprep.subr.bf16.mxu0 %v3653_v0  ;;  %418 = vmatprep.subr.bf16.mxu1 %v2485_v5  ;;  %v2480_v9 = vld [vmem:[%s3641_s0] sm:$0xff]   ;;  %v2488_v10 = vld [vmem:[#allocation3 + $0x8] ss:$12 sps:$4 sm:$0xff]   ;;  %v2492_v14 = vld [vmem:[#allocation3 + $0x20] ss:$12 sps:$4 sm:$0xff]   ;;  %s2784_s15 = smov [#allocation9]  }
  0x3b   :  { %419 = vmatpush1.bf16.msra.mxu1 %v2487_v6  ;;  %v2493_v11 = vld [vmem:[#allocation3 + $0x34] ss:$12 sps:$4 sm:$0xff]   ;;  %v2495_v12 = vld [vmem:[#allocation3 + $0x30] ss:$12 sps:$4 sm:$0xff]   ;;  %v2497_v13 = vld [vmem:[#allocation3 + $0x4c] ss:$12 sps:$4 sm:$0xff]  }
  0x3c   :  { %420 = vmatprep.subr.bf16.mxu1 %v2489_v7  ;;  %v2499_v15 = vld [vmem:[#allocation3 + $0x48] ss:$12 sps:$4 sm:$0xff]   ;;  %v2481_v16 = vld [vmem:[%s3641_s0 + $0x8] sm:$0xff]   ;;  %v2500_v19 = vld [vmem:[#allocation3 + $0x50] ss:$12 sps:$4 sm:$0xff]   ;;  %s1959_s16 = sshll.u32 %s2784_s15, 4  ;;  %s1960_s16 = int_to_ptr.vmem [resolvable:$true] %s1959_s16 }
  0x3d   :  { %2186 = vmatpush3.bf16.msra.mxu0 %v2477_v2  ;;  %v2501_v17 = vld [vmem:[#allocation3 + $0x64] ss:$12 sps:$4 sm:$0xff]   ;;  %v2503_v20 = vld [vmem:[#allocation3 + $0x60] ss:$12 sps:$4 sm:$0xff]   ;;  %v2505_v21 = vld [vmem:[#allocation3 + $0x7c] ss:$12 sps:$4 sm:$0xff]   ;;  %p2753_p11 = scmp.lt.s32.totalorder %s1960_s16, %s1960_s16 }
  0x3e   :  { %2187 = vmatprep.subr.bf16.mxu0 %v3653_v0  ;;  %v2496_v18 = vld [vmem:[#allocation3 + $0x38] ss:$12 sps:$4 sm:$0xff]   ;;  %v2482_v23 = vld [vmem:[%s3641_s0 + $0x10] sm:$0xff]   ;;  %v2509_v24 = vld [vmem:[#allocation3 + $0x94] ss:$12 sps:$4 sm:$0xff]   ;;  %s2748_s17 = scalar_lea.vmem %s1960_s16, 128 }
  0x3f   :  { %421 = vmatpush1.bf16.msra.mxu1 %v2491_v8  ;;  %v2507_v22 = vld [vmem:[#allocation3 + $0x78] ss:$12 sps:$4 sm:$0xff]   ;;  %v2504_v25 = vld [vmem:[#allocation3 + $0x68] ss:$12 sps:$4 sm:$0xff]   ;;  %v2511_v26 = vld [vmem:[#allocation3 + $0x90] ss:$12 sps:$4 sm:$0xff]   ;;  %p2749_p10 = scmp.ne.s32.totalorder %s1960_s16, %s2748_s17  ;;  %p2754_p12 = scmp.lt.s32.totalorder %s2748_s17, %s2748_s17 }
  0x40   :  { %422 = vmatprep.subr.bf16.mxu1 %v2493_v11  ;;  %v2508_v27 = vld [vmem:[#allocation3 + $0x80] ss:$12 sps:$4 sm:$0xff]   ;;  %v2483_v28 = vld [vmem:[%s3641_s0 + $0x18] sm:$0xff]   ;;  %v2484_v29 = vld [vmem:[%s3641_s0 + $0x20] sm:$0xff]  }
  0x41   :  { %2188 = vmatpush3.bf16.msra.mxu0 %v2478_v3  ;;  %v2512_v30 = vld [vmem:[#allocation3 + $0x98] ss:$12 sps:$4 sm:$0xff]   ;;  %v2515_v32 = vld [vmem:[#allocation3 + $0xa8] ss:$12 sps:$4 sm:$0xff]   ;;  %v2516_v33 = vld [vmem:[#allocation3 + $0xb0] ss:$12 sps:$4 sm:$0xff]   ;;  %p2755_p13 = por %p2754_p12, %p2753_p11 }
  0x42   :  { %2189 = vmatprep.subr.bf16.mxu0 %v3653_v0  ;;  %v2513_v31 = vld [vmem:[#allocation3 + $0xac] ss:$12 sps:$4 sm:$0xff]   ;;  %v2934_v34 = vld [vmem:[#allocation8 + $0x4] ss:$12 sps:$4 sm:$0xff]   ;;  %v2946_v43 = vld [vmem:[#allocation8] ss:$12 sps:$4 sm:$0xff]  }
  0x43   :  { %423 = vmatpush1.bf16.msra.mxu1 %v2495_v12  ;;  %v2942_v36 = vld [vmem:[%s3643_s2] ss:$0 sm:$0xff]  ;;  %v2948_v45 = vld [vmem:[#allocation8 + $0x1c] ss:$12 sps:$4 sm:$0xff]   ;;  %v2953_v48 = vld [vmem:[#allocation8 + $0x18] ss:$12 sps:$4 sm:$0xff]   ;;  %p2756_p0 = pnand %p2755_p13, %p2749_p10 }
  0x44   :  { %424 = vmatprep.subr.bf16.mxu1 %v2497_v13  ;;  %v2950_v46 = vld [vmem:[#allocation8 + $0x8] ss:$12 sps:$4 sm:$0xff]   ;;  %v2962_v52 = vld [vmem:[#allocation8 + $0x20] ss:$12 sps:$4 sm:$0xff]   ;;  %v2968_v56 = vld [vmem:[#allocation8 + $0x30] ss:$12 sps:$4 sm:$0xff]  }
  0x45   :  { %2190 = vmatpush3.bf16.msra.mxu0 %v2479_v4  ;;  %v2959_v50 = vld [vmem:[#allocation8 + $0x34] ss:$12 sps:$4 sm:$0xff]   ;;  %v2971_v58 = vld [vmem:[#allocation8 + $0x4c] ss:$12 sps:$4 sm:$0xff]   ;;  %v2983_v63 = vld [vmem:[#allocation8 + $0x64] ss:$12 sps:$4 sm:$0xff]  }
  0x46   :  { %2211 = vmatprep.subr.bf16.mxu0 %v3653_v0  ;;  %v2974_v59 = vld [vmem:[#allocation8 + $0x38] ss:$12 sps:$4 sm:$0xff]   ;;  %v2978_v61 = vld [vmem:[#allocation8 + $0x48] ss:$12 sps:$4 sm:$0xff]   ;;  %v2990_v5 = vld [vmem:[#allocation8 + $0x60] ss:$12 sps:$4 sm:$0xff]  }
  0x47   :  { %425 = vmatpush1.bf16.msra.mxu1 %v2499_v15  ;;  %v2994_v7 = vld [vmem:[#allocation8 + $0x7c] ss:$12 sps:$4 sm:$0xff]   ;;  %v3005_v12 = vld [vmem:[#allocation8 + $0x94] ss:$12 sps:$4 sm:$0xff]  }
  0x48   :  { %2192 = vmatmul.mubr.msk.bf16.vlgmr.msra.gmra.mrb[0].mxu0 %vm147_vm1, %v2480_v9  ;;  %426 = vmatprep.subr.bf16.mxu1 %v2501_v17  ;;  %v2996_v8 = vld [vmem:[#allocation8 + $0x50] ss:$12 sps:$4 sm:$0xff]  }
  0x49   :  { %2195 = vmatprep.mubr.msk.bf16.mxu0 %vm2782_vm0, %v3653_v0  ;;  %2212 = vmatpush3.bf16.msra.mxu0 %v2488_v10  ;;  %v3000_v10 = vld [vmem:[#allocation8 + $0x78] ss:$12 sps:$4 sm:$0xff]  }
  0x4a   :  { %2213 = vmatprep.subr.bf16.mxu0 %v3653_v0 }
  0x4b   :  { %427 = vmatpush1.bf16.msra.mxu1 %v2503_v20  ;;  %v3017_v20 = vld [vmem:[#allocation8 + $0xac] ss:$12 sps:$4 sm:$0xff]  }
  0x4c   :  { %428 = vmatprep.subr.bf16.mxu1 %v2505_v21  ;;  %v3020_v21 = vld [vmem:[#allocation8 + $0x80] ss:$12 sps:$4 sm:$0xff]  }
  0x4d   :  { %2214 = vmatpush3.bf16.msra.mxu0 %v2492_v14  ;;  %v3008_v14 = vld [vmem:[#allocation8 + $0x68] ss:$12 sps:$4 sm:$0xff]  }
  0x4e   :  { %2215 = vmatprep.subr.bf16.mxu0 %v3653_v0 }
  0x4f   :  { %429 = vmatpush1.bf16.msra.mxu1 %v2507_v22 }
  0x50   :  { %2196 = vmatmul.mubr.msk.bf16.gmra.mrb[4].mxu0 %vm147_vm1, %v2481_v16  ;;  %430 = vmatprep.subr.bf16.mxu1 %v2509_v24 }
  0x51   :  { %2199 = vmatprep.mubr.msk.bf16.mxu0 %vm2782_vm0, %v3653_v0  ;;  %2216 = vmatpush3.bf16.msra.mxu0 %v2496_v18  ;;  %v3014_v18 = vld [vmem:[#allocation8 + $0x90] ss:$12 sps:$4 sm:$0xff]  }
  0x52   :  { %2217 = vmatprep.subr.bf16.mxu0 %v3653_v0 }
  0x53   :  { %431 = vmatpush1.bf16.msra.mxu1 %v2511_v26 }
  0x54   :  { %432 = vmatprep.subr.bf16.mxu1 %v2513_v31  ;;  %v3040_v31 = vld [vmem:[#allocation8 + $0xb0] ss:$12 sps:$4 sm:$0xff]  }
  0x55   :  { %2218 = vmatpush3.bf16.msra.mxu0 %v2500_v19 }
  0x56   :  { %2219 = vmatprep.subr.bf16.mxu0 %v3653_v0 }
  0x57   :  { %433 = vmatpush1.bf16.msra.mxu1 %v2515_v32  ;;  %v275_v32 = vlaneseq }
  0x58   :  { %2200 = vmatmul.mubr.msk.bf16.gmra.mrb[8].mxu0 %vm147_vm1, %v2482_v23  ;;  %768 = vmatprep.subr.bf16.mxu1 %v2934_v34  ;;  %v3024_v23 = vld [vmem:[#allocation8 + $0xa8] ss:$12 sps:$4 sm:$0xff]  }
  0x59   :  { %2203 = vmatprep.mubr.msk.bf16.mxu0 %vm2782_vm0, %v3653_v0  ;;  %2220 = vmatpush3.bf16.msra.mxu0 %v2504_v25 }
  0x5a   :  { %2221 = vmatprep.subr.bf16.mxu0 %v3653_v0 }
  0x5d   :  { %2222 = vmatpush3.bf16.msra.mxu0 %v2508_v27 }
  0x5e   :  { %2223 = vmatprep.subr.bf16.mxu0 %v3653_v0 }
  0x60   :  { %2204 = vmatmul.mubr.msk.bf16.gmra.mrb[12].mxu0 %vm147_vm1, %v2483_v28 }
  0x61   :  { %2207 = vmatprep.mubr.msk.bf16.mxu0 %vm2782_vm0, %v3653_v0  ;;  %2224 = vmatpush3.bf16.msra.mxu0 %v2512_v30 }
  0x62   :  { %2225 = vmatprep.subr.bf16.mxu0 %v3653_v0 }
  0x65   :  { %2226 = vmatpush3.bf16.msra.mxu0 %v2516_v33  ;;  %v276_v33 = vshrl.u32 %v275_v32, 7 }
  0x66   :  { %2247 = vmatprep.subr.bf16.mxu0 %v3653_v0 }
  0x68   :  { %2208 = vmatmul.mubr.msk.bf16.gmra.mrb[16].mxu0 %vm147_vm1, %v2484_v29  ;;  %v3035_v29 = vld [vmem:[#allocation8 + $0x98] ss:$12 sps:$4 sm:$0xff]  }
  0x69   :  { %2227 = vmatprep.mubr.msk.bf16.mxu0 %vm2782_vm0, %v3653_v0 }
 0x11b   :  { %v197_v37 = vpop.f32.mrb[0].mxu0 }
 0x11c   :  { %v2193_v38 = vpop.f32.mrb[1].mxu0  ;;  %v198_v40 = vadd.f32 %v2942_v36, %v197_v37  ;;  %v285_v37 = vsub.s32 2, %v276_v33 }
 0x11d   :  { %v200_v39 = vpop.f32.mrb[2].mxu0  ;;  %v273_v38 = vld [vmem:[#allocation6] sm:$0x7] }
 0x11e   :  { %v201_v41 = vadd.f32 %v2942_v36, %v200_v39  ;;  %v2194_v42 = vpop.f32.mrb[3].mxu0  ;;  %v281_v39 = vsub.s32 1, %v276_v33 }
 0x120   :  { %v236_v44 = vpack.c.bf16 %v201_v41, %v198_v40 }
 0x122   :  { %451 = vmatmul.mubr.bf16.vlgmr.msra.gmra.mrb[0].mxu1 %v236_v44  ;;  %2228 = vmatmul.mubr.bf16.vlgmr.msra.gmra.mrb[20].mxu0 %v236_v44  ;;  %v3090_v44 = vrot.slane %v273_v38, %v285_v37 }
 0x123   :  { %769 = vmatpush1.bf16.msra.mxu1 %v2946_v43  ;;  %v205_v47 = vpop.f32.mrb[4].mxu0  ;;  %460 = vmatprep.mubr.bf16.mxu1 %v3651_v35 }
 0x124   :  { %v2197_v49 = vpop.f32.mrb[5].mxu0  ;;  %770 = vmatprep.subr.bf16.mxu1 %v2948_v45  ;;  %2231 = vmatprep.mubr.msk.bf16.mxu0 %vm2782_vm0, %v3653_v0  ;;  %v206_v53 = vadd.f32 %v2942_v36, %v205_v47 }
 0x125   :  { %v208_v51 = vpop.f32.mrb[6].mxu0  ;;  %2248 = vmatpush3.bf16.msra.mxu0 %v2950_v46 }
 0x126   :  { %v209_v54 = vadd.f32 %v2942_v36, %v208_v51  ;;  %v2198_v55 = vpop.f32.mrb[7].mxu0  ;;  %2249 = vmatprep.subr.bf16.mxu0 %v3653_v0  ;;  %v3094_v51 = vrot.slane %v273_v38, %v281_v39 }
 0x127   :  { %771 = vmatpush1.bf16.msra.mxu1 %v2953_v48 }
 0x128   :  { %v237_v57 = vpack.c.bf16 %v209_v54, %v206_v53  ;;  %772 = vmatprep.subr.bf16.mxu1 %v2959_v50 }
 0x129   :  { %2250 = vmatpush3.bf16.msra.mxu0 %v2962_v52 }
 0x12a   :  { %461 = vmatmul.mubr.bf16.gmra.mrb[4].mxu1 %v237_v57  ;;  %2232 = vmatmul.mubr.bf16.gmra.mrb[24].mxu0 %v237_v57 }
 0x12b   :  { %v213_v60 = vpop.f32.mrb[8].mxu0  ;;  %773 = vmatpush1.bf16.msra.mxu1 %v2968_v56  ;;  %470 = vmatprep.mubr.bf16.mxu1 %v3651_v35 }
 0x12c   :  { %v2201_v62 = vpop.f32.mrb[9].mxu0  ;;  %774 = vmatprep.subr.bf16.mxu1 %v2971_v58  ;;  %2235 = vmatprep.mubr.msk.bf16.mxu0 %vm2782_vm0, %v3653_v0  ;;  %v214_v2 = vadd.f32 %v2942_v36, %v213_v60 }
 0x12d   :  { %v216_v1 = vpop.f32.mrb[10].mxu0  ;;  %2251 = vmatprep.subr.bf16.mxu0 %v3653_v0 }
 0x12e   :  { %v217_v3 = vadd.f32 %v2942_v36, %v216_v1  ;;  %v2202_v4 = vpop.f32.mrb[11].mxu0  ;;  %2252 = vmatpush3.bf16.msra.mxu0 %v2974_v59 }
 0x12f   :  { %775 = vmatpush1.bf16.msra.mxu1 %v2978_v61  ;;  %2253 = vmatprep.subr.bf16.mxu0 %v3653_v0 }
 0x130   :  { %v238_v6 = vpack.c.bf16 %v217_v3, %v214_v2  ;;  %776 = vmatprep.subr.bf16.mxu1 %v2983_v63 }
 0x132   :  { %471 = vmatmul.mubr.bf16.gmra.mrb[8].mxu1 %v238_v6  ;;  %2236 = vmatmul.mubr.bf16.gmra.mrb[28].mxu0 %v238_v6 }
 0x133   :  { %v221_v9 = vpop.f32.mrb[12].mxu0  ;;  %777 = vmatpush1.bf16.msra.mxu1 %v2990_v5  ;;  %480 = vmatprep.mubr.bf16.mxu1 %v3651_v35 }
 0x134   :  { %v2205_v11 = vpop.f32.mrb[13].mxu0  ;;  %2239 = vmatprep.mubr.msk.bf16.mxu0 %vm2782_vm0, %v3653_v0  ;;  %778 = vmatprep.subr.bf16.mxu1 %v2994_v7  ;;  %v222_v15 = vadd.f32 %v2942_v36, %v221_v9 }
 0x135   :  { %v224_v13 = vpop.f32.mrb[14].mxu0  ;;  %2254 = vmatpush3.bf16.msra.mxu0 %v2996_v8 }
 0x136   :  { %v225_v16 = vadd.f32 %v2942_v36, %v224_v13  ;;  %v2206_v17 = vpop.f32.mrb[15].mxu0  ;;  %2255 = vmatprep.subr.bf16.mxu0 %v3653_v0 }
 0x137   :  { %779 = vmatpush1.bf16.msra.mxu1 %v3000_v10 }
 0x138   :  { %v239_v19 = vpack.c.bf16 %v225_v16, %v222_v15  ;;  %780 = vmatprep.subr.bf16.mxu1 %v3005_v12 }
 0x139   :  { %2256 = vmatpush3.bf16.msra.mxu0 %v3008_v14 }
 0x13a   :  { %481 = vmatmul.mubr.bf16.gmra.mrb[12].mxu1 %v239_v19  ;;  %2240 = vmatmul.mubr.bf16.gmra.mrb[32].mxu0 %v239_v19 }
 0x13b   :  { %v229_v22 = vpop.f32.mrb[16].mxu0  ;;  %781 = vmatpush1.bf16.msra.mxu1 %v3014_v18  ;;  %490 = vmatprep.mubr.bf16.mxu1 %v3651_v35 }
 0x13c   :  { %v2209_v24 = vpop.f32.mrb[17].mxu0  ;;  %2243 = vmatprep.mubr.msk.bf16.mxu0 %vm2782_vm0, %v3653_v0  ;;  %782 = vmatprep.subr.bf16.mxu1 %v3017_v20  ;;  %v230_v26 = vadd.f32 %v2942_v36, %v229_v22 }
 0x13d   :  { %v232_v25 = vpop.f32.mrb[18].mxu0  ;;  %2257 = vmatprep.subr.bf16.mxu0 %v3653_v0 }
 0x13e   :  { %v233_v27 = vadd.f32 %v2942_v36, %v232_v25  ;;  %v2210_v28 = vpop.f32.mrb[19].mxu0  ;;  %2258 = vmatpush3.bf16.msra.mxu0 %v3020_v21  ;;  %v277_v36 = vsub.s32 0, %v276_v33 }
 0x13f   :  { %783 = vmatpush1.bf16.msra.mxu1 %v3024_v23  ;;  %2259 = vmatprep.subr.bf16.mxu0 %v3653_v0 }
 0x140   :  { %v240_v30 = vpack.c.bf16 %v233_v27, %v230_v26  ;;  %881 = vmatprep.subr.bf16.mxu1 %v2934_v34  ;;  %v3088_v42 = vrot.slane %v273_v38, %v277_v36 }
 0x142   :  { %491 = vmatmul.mubr.bf16.gmra.mrb[16].mxu1 %v240_v30  ;;  %2244 = vmatmul.mubr.bf16.gmra.mrb[36].mxu0 %v240_v30 }
 0x143   :  { %800 = vmatprep.mubr.bf16.mxu1 %v3651_v35  ;;  %2260 = vmatpush3.bf16.msra.mxu0 %v3035_v29 }
 0x144   :  { %2261 = vmatprep.subr.bf16.mxu0 %v3653_v0  ;;  %2263 = vmatprep.mubr.msk.bf16.mxu0 %vm2782_vm0, %v3653_v0 }
 0x147   :  { %2262 = vmatpush3.bf16.msra.mxu0 %v3040_v31 }
 0x148   :  { %2267 = vmatprep.subr.bf16.mxu0 %v3653_v0 }
 0x14a   :  { %801 = vmatmul.mubr.bf16.vlgmr.msra.gmra.mrb[20].mxu1 %v3651_v35  ;;  %2264 = vmatmul.mubr.bf16.vlgmr.msra.gmra.mrb[40].mxu0 %v3651_v35 }
 0x14b   :  { %882 = vmatpush1.bf16.msra.mxu1 %v2946_v43  ;;  %2268 = vmatpush3.bf16.msra.mxu0 %v2950_v46 }
 0x14c   :  { %883 = vmatprep.subr.bf16.mxu1 %v2948_v45  ;;  %2269 = vmatprep.subr.bf16.mxu0 %v3653_v0 }
 0x14d   :  { %913 = vmatprep.mubr.bf16.mxu1 %v3651_v35  ;;  %2283 = vmatprep.mubr.msk.bf16.mxu0 %vm2782_vm0, %v3653_v0 }
 0x14f   :  { %884 = vmatpush1.bf16.msra.mxu1 %v2953_v48  ;;  %2270 = vmatpush3.bf16.msra.mxu0 %v2962_v52 }
 0x150   :  { %885 = vmatprep.subr.bf16.mxu1 %v2959_v50  ;;  %2271 = vmatprep.subr.bf16.mxu0 %v3653_v0 }
 0x153   :  { %886 = vmatpush1.bf16.msra.mxu1 %v2968_v56  ;;  %2272 = vmatpush3.bf16.msra.mxu0 %v2974_v59 }
 0x154   :  { %887 = vmatprep.subr.bf16.mxu1 %v2971_v58  ;;  %2273 = vmatprep.subr.bf16.mxu0 %v3653_v0 }
 0x157   :  { %888 = vmatpush1.bf16.msra.mxu1 %v2978_v61  ;;  %2274 = vmatpush3.bf16.msra.mxu0 %v2996_v8 }
 0x158   :  { %889 = vmatprep.subr.bf16.mxu1 %v2983_v63  ;;  %2275 = vmatprep.subr.bf16.mxu0 %v3653_v0 }
 0x15b   :  { %890 = vmatpush1.bf16.msra.mxu1 %v2990_v5  ;;  %2276 = vmatpush3.bf16.msra.mxu0 %v3008_v14 }
 0x15c   :  { %891 = vmatprep.subr.bf16.mxu1 %v2994_v7  ;;  %2277 = vmatprep.subr.bf16.mxu0 %v3653_v0 }
 0x15f   :  { %892 = vmatpush1.bf16.msra.mxu1 %v3000_v10  ;;  %2278 = vmatpush3.bf16.msra.mxu0 %v3020_v21 }
 0x160   :  { %893 = vmatprep.subr.bf16.mxu1 %v3005_v12  ;;  %2279 = vmatprep.subr.bf16.mxu0 %v3653_v0 }
 0x163   :  { %894 = vmatpush1.bf16.msra.mxu1 %v3014_v18  ;;  %2280 = vmatpush3.bf16.msra.mxu0 %v3035_v29 }
 0x164   :  { %895 = vmatprep.subr.bf16.mxu1 %v3017_v20  ;;  %2281 = vmatprep.subr.bf16.mxu0 %v3653_v0 }
 0x167   :  { %896 = vmatpush1.bf16.msra.mxu1 %v3024_v23  ;;  %2282 = vmatpush3.bf16.msra.mxu0 %v3040_v31 }
 0x168   :  { %988 = vmatprep.subr.bf16.mxu1 %v2934_v34  ;;  %2287 = vmatprep.subr.bf16.mxu0 %v3653_v0 }
 0x1f5   :  { %v3084_v40 = vpop.f32.mrb[0].mxu1  ;;  %v3086_v41 = vpop.f32.mrb[20].mxu0 }
 0x1f6   :  { %v3092_v47 = vpop.f32.mrb[1].mxu1  ;;  %v2229_v49 = vpop.f32.mrb[21].mxu0 }
 0x1f7   :  { %v456_v53 = vpop.f32.mrb[2].mxu1  ;;  %v538_v54 = vpop.f32.mrb[22].mxu0 }
 0x1f8   :  { %v3097_v55 = vadd.f32 %v456_v53, %v3088_v42  ;;  %v3100_v57 = vadd.f32 %v538_v54, %v3090_v44  ;;  %v458_v60 = vpop.f32.mrb[3].mxu1  ;;  %v2230_v62 = vpop.f32.mrb[23].mxu0 }
 0x1f9   :  { %v3103_v1 = vadd.f32 %v458_v60, %v3094_v51 }
 0x1fd   :  { %v462_v2 = vpop.f32.mrb[4].mxu1  ;;  %v543_v3 = vpop.f32.mrb[24].mxu0 }
 0x1fe   :  { %v3106_v4 = vadd.f32 %v462_v2, %v3088_v42  ;;  %v3109_v6 = vadd.f32 %v543_v3, %v3090_v44  ;;  %v464_v9 = vpop.f32.mrb[5].mxu1  ;;  %v2233_v11 = vpop.f32.mrb[25].mxu0 }
 0x1ff   :  { %v3112_v13 = vadd.f32 %v464_v9, %v3094_v51  ;;  %v466_v15 = vpop.f32.mrb[6].mxu1  ;;  %v546_v16 = vpop.f32.mrb[26].mxu0 }
 0x200   :  { %v3115_v17 = vadd.f32 %v466_v15, %v3088_v42  ;;  %v3118_v19 = vadd.f32 %v546_v16, %v3090_v44  ;;  %v468_v22 = vpop.f32.mrb[7].mxu1  ;;  %v2234_v24 = vpop.f32.mrb[27].mxu0 }
 0x201   :  { %v3121_v25 = vadd.f32 %v468_v22, %v3094_v51 }
 0x205   :  { %v472_v26 = vpop.f32.mrb[8].mxu1  ;;  %v551_v27 = vpop.f32.mrb[28].mxu0 }
 0x206   :  { %v3124_v28 = vadd.f32 %v472_v26, %v3088_v42  ;;  %v3127_v30 = vadd.f32 %v551_v27, %v3090_v44  ;;  %v474_v32 = vpop.f32.mrb[9].mxu1  ;;  %v2237_v33 = vpop.f32.mrb[29].mxu0 }
 0x207   :  { %v3130_v36 = vadd.f32 %v474_v32, %v3094_v51  ;;  %v476_v37 = vpop.f32.mrb[10].mxu1  ;;  %v554_v38 = vpop.f32.mrb[30].mxu0 }
 0x208   :  { %v3133_v39 = vadd.f32 %v476_v37, %v3088_v42  ;;  %v3136_v49 = vadd.f32 %v554_v38, %v3090_v44  ;;  %v478_v53 = vpop.f32.mrb[11].mxu1  ;;  %v2238_v54 = vpop.f32.mrb[31].mxu0 }
 0x209   :  { %v3139_v60 = vadd.f32 %v478_v53, %v3094_v51 }
 0x20d   :  { %v482_v62 = vpop.f32.mrb[12].mxu1  ;;  %v559_v2 = vpop.f32.mrb[32].mxu0 }
 0x20e   :  { %v3142_v3 = vadd.f32 %v482_v62, %v3088_v42  ;;  %v3145_v9 = vadd.f32 %v559_v2, %v3090_v44  ;;  %v484_v11 = vpop.f32.mrb[13].mxu1  ;;  %v2241_v15 = vpop.f32.mrb[33].mxu0 }
 0x20f   :  { %v3148_v16 = vadd.f32 %v484_v11, %v3094_v51  ;;  %v486_v22 = vpop.f32.mrb[14].mxu1  ;;  %v562_v24 = vpop.f32.mrb[34].mxu0 }
 0x210   :  { %v3151_v26 = vadd.f32 %v486_v22, %v3088_v42  ;;  %v3154_v27 = vadd.f32 %v562_v24, %v3090_v44  ;;  %v488_v32 = vpop.f32.mrb[15].mxu1  ;;  %v2242_v33 = vpop.f32.mrb[35].mxu0 }
 0x211   :  { %v3157_v37 = vadd.f32 %v488_v32, %v3094_v51 }
 0x212   :  { %3655 = vst [vmem:[#allocation13_spill] sm:$0xff] %v3151_v26  ;;  %3656 = vst [vmem:[#allocation14_spill] sm:$0xff] %v3154_v27 }
 0x213   :  { %3657 = vst [vmem:[#allocation15_spill] sm:$0xff] %v3157_v37 }
 0x215   :  { %v492_v38 = vpop.f32.mrb[16].mxu1  ;;  %v567_v53 = vpop.f32.mrb[36].mxu0 }
 0x216   :  { %v3160_v54 = vadd.f32 %v492_v38, %v3088_v42  ;;  %v3163_v62 = vadd.f32 %v567_v53, %v3090_v44  ;;  %v494_v2 = vpop.f32.mrb[17].mxu1  ;;  %v2245_v11 = vpop.f32.mrb[37].mxu0  ;;  %v453_v53 = vadd.f32 %v3084_v40, %v3088_v42 }
 0x217   :  { %v3166_v15 = vadd.f32 %v494_v2, %v3094_v51  ;;  %v496_v22 = vpop.f32.mrb[18].mxu1  ;;  %v570_v24 = vpop.f32.mrb[38].mxu0  ;;  %v455_v2 = vadd.f32 %v3092_v47, %v3094_v51 }
 0x218   :  { %3658 = vst [vmem:[#allocation16_spill] sm:$0xff] %v3160_v54  ;;  %3659 = vst [vmem:[#allocation17_spill] sm:$0xff] %v3163_v62  ;;  %v3169_v33 = vadd.f32 %v496_v22, %v3088_v42  ;;  %v3172_v32 = vadd.f32 %v570_v24, %v3090_v44  ;;  %v498_v35 = vpop.f32.mrb[19].mxu1  ;;  %v2246_v0 = vpop.f32.mrb[39].mxu0  ;;  %v3184_v42 = vld [vmem:[%s3647_s6] ss:$0 sm:$0xff] }
 0x219   :  { %3660 = vst [vmem:[#allocation18_spill] sm:$0xff] %v3166_v15  ;;  %v3175_v38 = vadd.f32 %v498_v35, %v3094_v51 }
 0x21a   :  { %3661 = vst [vmem:[#allocation19_spill] sm:$0xff] %v3169_v33  ;;  %3662 = vst [vmem:[#allocation20_spill] sm:$0xff] %v3172_v32 }
 0x21b   :  { %3663 = vst [vmem:[#allocation21_spill] sm:$0xff] %v3175_v38 }
 0x21d   :  { %v802_v11 = vpop.f32.mrb[20].mxu1  ;;  %v843_v62 = vpop.f32.mrb[40].mxu0 }
 0x21e   :  { %v849_v15 = vadd.f32 %v802_v11, %v453_v53  ;;  %v804_v54 = vpop.f32.mrb[21].mxu1  ;;  %v2265_v22 = vpop.f32.mrb[41].mxu0  ;;  %v869_v51 = vadd.f32 %v3184_v42, %v843_v62 }
 0x21f   :  { %v856_v33 = vadd.f32 %v804_v54, %v455_v2  ;;  %v806_v27 = vpop.f32.mrb[22].mxu1  ;;  %v846_v24 = vpop.f32.mrb[42].mxu0 }
 0x220   :  { %v2032_v32 = vmul.f32 -1.442695, %v849_v15  ;;  %v807_v37 = vpop.f32.mrb[23].mxu1  ;;  %v2266_v0 = vpop.f32.mrb[43].mxu0 }
 0x221   :  { %v2033_v35 = vmul.f32 -1.442695, %v856_v33  ;;  %v536_v37 = vadd.f32 %v3086_v41, %v3090_v44  ;;  %v3664_v41 = vmov 0.0   ;;  %v3665_v44 = vmov 0  }
 0x222   :  { %2557 = vpow2.f32 %v2032_v32 }
 0x223   :  { %2559 = vpow2.f32 %v2033_v35 }
 0x22c   :  { %v2558_v38 = vpop.eup %2557 }
 0x22d   :  { %v853_v26 = vadd.f32 1.0, %v2558_v38  ;;  %v2560_v40 = vpop.eup %2559 }
 0x22e   :  { %v860_v47 = vadd.f32 1.0, %v2560_v40 }
 0x22f   :  { %2561 = vrcp.f32 %v853_v26 }
 0x230   :  { %2563 = vrcp.f32 %v860_v47 }
 0x239   :  { %v2562_v27 = vpop.eup %2561 }
 0x23a   :  { %v870_v54 = vmul.f32 %v2562_v27, %v869_v51  ;;  %v2564_v33 = vpop.eup %2563 }
 0x23b   :  { %v873_v32 = vsub.f32 1.0, %v2564_v33  ;;  %v875_v53 = vmul.f32 0.0, %v2564_v33 }
 0x23c   :  { %v871_v15 = vadd.f32 %v870_v54, %v536_v37 }
 0x23e   :  { %2565 = vtanh.f32 %v871_v15 }
 0x248   :  { %v2566_v26 = vpop.eup %2565 }
 0x249   :  { %v874_v38 = vmul.f32 %v2566_v26, %v873_v32 }
 0x24b   :  { %v3189_v2 = vadd.f32 %v875_v53, %v874_v38 }
 0x24d   :  { %v880_v11 = vpack.c.bf16 %v3189_v2, %v3189_v2 }
 0x24f   :  { %914 = vmatmul.mubr.bf16.vlgmr.msra.gmra.mrb[24].mxu1 %v880_v11  ;;  %2284 = vmatmul.mubr.bf16.vlgmr.msra.gmra.mrb[44].mxu0 %v880_v11 }
 0x250   :  { %989 = vmatpush1.bf16.msra.mxu1 %v2946_v43  ;;  %2288 = vmatpush3.bf16.msra.mxu0 %v2950_v46 }
 0x251   :  { %990 = vmatprep.subr.bf16.mxu1 %v2948_v45  ;;  %2289 = vmatprep.subr.bf16.mxu0 %v3664_v41 }
 0x252   :  { %1020 = vmatprep.mubr.bf16.mxu1 %v3665_v44  ;;  %2303 = vmatprep.mubr.msk.bf16.mxu0 %vm2782_vm0, %v3664_v41 }
 0x254   :  { %991 = vmatpush1.bf16.msra.mxu1 %v2953_v48  ;;  %2290 = vmatpush3.bf16.msra.mxu0 %v2962_v52 }
 0x255   :  { %992 = vmatprep.subr.bf16.mxu1 %v2959_v50  ;;  %2291 = vmatprep.subr.bf16.mxu0 %v3664_v41 }
 0x258   :  { %993 = vmatpush1.bf16.msra.mxu1 %v2968_v56  ;;  %2292 = vmatpush3.bf16.msra.mxu0 %v2974_v59 }
 0x259   :  { %994 = vmatprep.subr.bf16.mxu1 %v2971_v58  ;;  %2293 = vmatprep.subr.bf16.mxu0 %v3664_v41 }
 0x25c   :  { %995 = vmatpush1.bf16.msra.mxu1 %v2978_v61  ;;  %2294 = vmatpush3.bf16.msra.mxu0 %v2996_v8 }
 0x25d   :  { %996 = vmatprep.subr.bf16.mxu1 %v2983_v63  ;;  %2295 = vmatprep.subr.bf16.mxu0 %v3664_v41 }
 0x260   :  { %997 = vmatpush1.bf16.msra.mxu1 %v2990_v5  ;;  %2296 = vmatpush3.bf16.msra.mxu0 %v3008_v14 }
 0x261   :  { %998 = vmatprep.subr.bf16.mxu1 %v2994_v7  ;;  %2297 = vmatprep.subr.bf16.mxu0 %v3664_v41 }
 0x264   :  { %999 = vmatpush1.bf16.msra.mxu1 %v3000_v10  ;;  %2298 = vmatpush3.bf16.msra.mxu0 %v3020_v21 }
 0x265   :  { %1000 = vmatprep.subr.bf16.mxu1 %v3005_v12  ;;  %2299 = vmatprep.subr.bf16.mxu0 %v3664_v41 }
 0x268   :  { %1001 = vmatpush1.bf16.msra.mxu1 %v3014_v18  ;;  %2300 = vmatpush3.bf16.msra.mxu0 %v3035_v29 }
 0x269   :  { %1002 = vmatprep.subr.bf16.mxu1 %v3017_v20  ;;  %2301 = vmatprep.subr.bf16.mxu0 %v3664_v41 }
 0x26c   :  { %1003 = vmatpush1.bf16.msra.mxu1 %v3024_v23  ;;  %2302 = vmatpush3.bf16.msra.mxu0 %v3040_v31 }
 0x26d   :  { %1095 = vmatprep.subr.bf16.mxu1 %v2934_v34  ;;  %2307 = vmatprep.subr.bf16.mxu0 %v3664_v41 }
 0x322   :  { %v915_v62 = vpop.f32.mrb[24].mxu1  ;;  %v956_v22 = vpop.f32.mrb[44].mxu0 }
 0x323   :  { %v962_v24 = vadd.f32 %v915_v62, %v3097_v55  ;;  %v917_v0 = vpop.f32.mrb[25].mxu1  ;;  %v2285_v35 = vpop.f32.mrb[45].mxu0  ;;  %v976_v53 = vadd.f32 %v3184_v42, %v956_v22 }
 0x324   :  { %v969_v40 = vadd.f32 %v917_v0, %v3103_v1  ;;  %v919_v47 = vpop.f32.mrb[26].mxu1  ;;  %v959_v51 = vpop.f32.mrb[46].mxu0 }
 0x325   :  { %v2035_v27 = vmul.f32 -1.442695, %v962_v24  ;;  %v920_v37 = vpop.f32.mrb[27].mxu1  ;;  %v2286_v54 = vpop.f32.mrb[47].mxu0 }
 0x326   :  { %v2036_v15 = vmul.f32 -1.442695, %v969_v40 }
 0x327   :  { %2567 = vpow2.f32 %v2035_v27 }
 0x328   :  { %2569 = vpow2.f32 %v2036_v15 }
 0x331   :  { %v2568_v33 = vpop.eup %2567 }
 0x332   :  { %v966_v32 = vadd.f32 1.0, %v2568_v33  ;;  %v2570_v26 = vpop.eup %2569 }
 0x333   :  { %v973_v38 = vadd.f32 1.0, %v2570_v26 }
 0x334   :  { %2571 = vrcp.f32 %v966_v32 }
 0x335   :  { %2573 = vrcp.f32 %v973_v38 }
 0x33e   :  { %v2572_v55 = vpop.eup %2571 }
 0x33f   :  { %v977_v11 = vmul.f32 %v2572_v55, %v976_v53  ;;  %v2574_v62 = vpop.eup %2573 }
 0x340   :  { %v980_v24 = vsub.f32 1.0, %v2574_v62  ;;  %v982_v40 = vmul.f32 %v2574_v62, %v3189_v2 }
 0x341   :  { %v978_v1 = vadd.f32 %v977_v11, %v3100_v57 }
 0x343   :  { %2575 = vtanh.f32 %v978_v1 }
 0x34d   :  { %v2576_v0 = vpop.eup %2575 }
 0x34e   :  { %v981_v35 = vmul.f32 %v2576_v0, %v980_v24 }
 0x350   :  { %v3233_v47 = vadd.f32 %v982_v40, %v981_v35 }
 0x352   :  { %v987_v51 = vpack.c.bf16 %v3233_v47, %v3233_v47 }
 0x354   :  { %1021 = vmatmul.mubr.bf16.vlgmr.msra.gmra.mrb[28].mxu1 %v987_v51  ;;  %2304 = vmatmul.mubr.bf16.vlgmr.msra.gmra.mrb[48].mxu0 %v987_v51 }
 0x355   :  { %1096 = vmatpush1.bf16.msra.mxu1 %v2946_v43  ;;  %2308 = vmatpush3.bf16.msra.mxu0 %v2950_v46 }
 0x356   :  { %1097 = vmatprep.subr.bf16.mxu1 %v2948_v45  ;;  %2309 = vmatprep.subr.bf16.mxu0 %v3664_v41 }
 0x357   :  { %1127 = vmatprep.mubr.bf16.mxu1 %v3665_v44  ;;  %2323 = vmatprep.mubr.msk.bf16.mxu0 %vm2782_vm0, %v3664_v41 }
 0x359   :  { %1098 = vmatpush1.bf16.msra.mxu1 %v2953_v48  ;;  %2310 = vmatpush3.bf16.msra.mxu0 %v2962_v52 }
 0x35a   :  { %1099 = vmatprep.subr.bf16.mxu1 %v2959_v50  ;;  %2311 = vmatprep.subr.bf16.mxu0 %v3664_v41 }
 0x35d   :  { %1100 = vmatpush1.bf16.msra.mxu1 %v2968_v56  ;;  %2312 = vmatpush3.bf16.msra.mxu0 %v2974_v59 }
 0x35e   :  { %1101 = vmatprep.subr.bf16.mxu1 %v2971_v58  ;;  %2313 = vmatprep.subr.bf16.mxu0 %v3664_v41 }
 0x361   :  { %1102 = vmatpush1.bf16.msra.mxu1 %v2978_v61  ;;  %2314 = vmatpush3.bf16.msra.mxu0 %v2996_v8 }
 0x362   :  { %1103 = vmatprep.subr.bf16.mxu1 %v2983_v63  ;;  %2315 = vmatprep.subr.bf16.mxu0 %v3664_v41 }
 0x365   :  { %1104 = vmatpush1.bf16.msra.mxu1 %v2990_v5  ;;  %2316 = vmatpush3.bf16.msra.mxu0 %v3008_v14 }
 0x366   :  { %1105 = vmatprep.subr.bf16.mxu1 %v2994_v7  ;;  %2317 = vmatprep.subr.bf16.mxu0 %v3664_v41 }
 0x369   :  { %1106 = vmatpush1.bf16.msra.mxu1 %v3000_v10  ;;  %2318 = vmatpush3.bf16.msra.mxu0 %v3020_v21 }
 0x36a   :  { %1107 = vmatprep.subr.bf16.mxu1 %v3005_v12  ;;  %2319 = vmatprep.subr.bf16.mxu0 %v3664_v41 }
 0x36d   :  { %1108 = vmatpush1.bf16.msra.mxu1 %v3014_v18  ;;  %2320 = vmatpush3.bf16.msra.mxu0 %v3035_v29 }
 0x36e   :  { %1109 = vmatprep.subr.bf16.mxu1 %v3017_v20  ;;  %2321 = vmatprep.subr.bf16.mxu0 %v3664_v41 }
 0x371   :  { %1110 = vmatpush1.bf16.msra.mxu1 %v3024_v23  ;;  %2322 = vmatpush3.bf16.msra.mxu0 %v3040_v31 }
 0x372   :  { %1202 = vmatprep.subr.bf16.mxu1 %v2934_v34  ;;  %2327 = vmatprep.subr.bf16.mxu0 %v3664_v41 }
 0x427   :  { %v1022_v57 = vpop.f32.mrb[28].mxu1  ;;  %v1063_v2 = vpop.f32.mrb[48].mxu0 }
 0x428   :  { %v1069_v22 = vadd.f32 %v1022_v57, %v3106_v4  ;;  %v1024_v27 = vpop.f32.mrb[29].mxu1  ;;  %v2305_v37 = vpop.f32.mrb[49].mxu0  ;;  %v1083_v24 = vadd.f32 %v3184_v42, %v1063_v2 }
 0x429   :  { %v1076_v54 = vadd.f32 %v1024_v27, %v3112_v13  ;;  %v1026_v15 = vpop.f32.mrb[30].mxu1  ;;  %v1066_v33 = vpop.f32.mrb[50].mxu0 }
 0x42a   :  { %v2037_v32 = vmul.f32 -1.442695, %v1069_v22  ;;  %v1027_v26 = vpop.f32.mrb[31].mxu1  ;;  %v2306_v38 = vpop.f32.mrb[51].mxu0 }
 0x42b   :  { %v2038_v53 = vmul.f32 -1.442695, %v1076_v54 }
 0x42c   :  { %2577 = vpow2.f32 %v2037_v32 }
 0x42d   :  { %2579 = vpow2.f32 %v2038_v53 }
 0x436   :  { %v2578_v55 = vpop.eup %2577 }
 0x437   :  { %v1073_v11 = vadd.f32 1.0, %v2578_v55  ;;  %v2580_v1 = vpop.eup %2579 }
 0x438   :  { %v1080_v62 = vadd.f32 1.0, %v2580_v1 }
 0x439   :  { %2581 = vrcp.f32 %v1073_v11 }
 0x43a   :  { %2583 = vrcp.f32 %v1080_v62 }
 0x443   :  { %v2582_v4 = vpop.eup %2581 }
 0x444   :  { %v1084_v0 = vmul.f32 %v2582_v4, %v1083_v24  ;;  %v2584_v35 = vpop.eup %2583 }
 0x445   :  { %v1087_v40 = vsub.f32 1.0, %v2584_v35  ;;  %v1089_v22 = vmul.f32 %v2584_v35, %v3233_v47 }
 0x446   :  { %v1085_v13 = vadd.f32 %v1084_v0, %v3109_v6 }
 0x448   :  { %2585 = vtanh.f32 %v1085_v13 }
 0x452   :  { %v2586_v51 = vpop.eup %2585 }
 0x453   :  { %v1088_v57 = vmul.f32 %v2586_v51, %v1087_v40 }
 0x455   :  { %v3277_v27 = vadd.f32 %v1089_v22, %v1088_v57 }
 0x457   :  { %v1094_v37 = vpack.c.bf16 %v3277_v27, %v3277_v27 }
 0x459   :  { %1128 = vmatmul.mubr.bf16.vlgmr.msra.gmra.mrb[32].mxu1 %v1094_v37  ;;  %2324 = vmatmul.mubr.bf16.vlgmr.msra.gmra.mrb[52].mxu0 %v1094_v37 }
 0x45a   :  { %1203 = vmatpush1.bf16.msra.mxu1 %v2946_v43  ;;  %2328 = vmatpush3.bf16.msra.mxu0 %v2950_v46 }
 0x45b   :  { %1204 = vmatprep.subr.bf16.mxu1 %v2948_v45  ;;  %2329 = vmatprep.subr.bf16.mxu0 %v3664_v41 }
 0x45c   :  { %1234 = vmatprep.mubr.bf16.mxu1 %v3665_v44  ;;  %2343 = vmatprep.mubr.msk.bf16.mxu0 %vm2782_vm0, %v3664_v41 }
 0x45e   :  { %1205 = vmatpush1.bf16.msra.mxu1 %v2953_v48  ;;  %2330 = vmatpush3.bf16.msra.mxu0 %v2962_v52 }
 0x45f   :  { %1206 = vmatprep.subr.bf16.mxu1 %v2959_v50  ;;  %2331 = vmatprep.subr.bf16.mxu0 %v3664_v41 }
 0x462   :  { %1207 = vmatpush1.bf16.msra.mxu1 %v2968_v56  ;;  %2332 = vmatpush3.bf16.msra.mxu0 %v2974_v59 }
 0x463   :  { %1208 = vmatprep.subr.bf16.mxu1 %v2971_v58  ;;  %2333 = vmatprep.subr.bf16.mxu0 %v3664_v41 }
 0x466   :  { %1209 = vmatpush1.bf16.msra.mxu1 %v2978_v61  ;;  %2334 = vmatpush3.bf16.msra.mxu0 %v2996_v8 }
 0x467   :  { %1210 = vmatprep.subr.bf16.mxu1 %v2983_v63  ;;  %2335 = vmatprep.subr.bf16.mxu0 %v3664_v41 }
 0x46a   :  { %1211 = vmatpush1.bf16.msra.mxu1 %v2990_v5  ;;  %2336 = vmatpush3.bf16.msra.mxu0 %v3008_v14 }
 0x46b   :  { %1212 = vmatprep.subr.bf16.mxu1 %v2994_v7  ;;  %2337 = vmatprep.subr.bf16.mxu0 %v3664_v41 }
 0x46e   :  { %1213 = vmatpush1.bf16.msra.mxu1 %v3000_v10  ;;  %2338 = vmatpush3.bf16.msra.mxu0 %v3020_v21 }
 0x46f   :  { %1214 = vmatprep.subr.bf16.mxu1 %v3005_v12  ;;  %2339 = vmatprep.subr.bf16.mxu0 %v3664_v41 }
 0x472   :  { %1215 = vmatpush1.bf16.msra.mxu1 %v3014_v18  ;;  %2340 = vmatpush3.bf16.msra.mxu0 %v3035_v29 }
 0x473   :  { %1216 = vmatprep.subr.bf16.mxu1 %v3017_v20  ;;  %2341 = vmatprep.subr.bf16.mxu0 %v3664_v41 }
 0x476   :  { %1217 = vmatpush1.bf16.msra.mxu1 %v3024_v23  ;;  %2342 = vmatpush3.bf16.msra.mxu0 %v3040_v31 }
 0x477   :  { %1309 = vmatprep.subr.bf16.mxu1 %v2934_v34  ;;  %2347 = vmatprep.subr.bf16.mxu0 %v3664_v41 }
 0x52c   :  { %v1129_v6 = vpop.f32.mrb[32].mxu1  ;;  %v1170_v47 = vpop.f32.mrb[52].mxu0 }
 0x52d   :  { %v1176_v2 = vadd.f32 %v1129_v6, %v3115_v17  ;;  %v1131_v54 = vpop.f32.mrb[33].mxu1  ;;  %v2325_v15 = vpop.f32.mrb[53].mxu0  ;;  %v1190_v0 = vadd.f32 %v3184_v42, %v1170_v47 }
 0x52e   :  { %v1183_v33 = vadd.f32 %v1131_v54, %v3121_v25  ;;  %v1133_v32 = vpop.f32.mrb[34].mxu1  ;;  %v1173_v26 = vpop.f32.mrb[54].mxu0 }
 0x52f   :  { %v2039_v38 = vmul.f32 -1.442695, %v1176_v2  ;;  %v1134_v53 = vpop.f32.mrb[35].mxu1  ;;  %v2326_v55 = vpop.f32.mrb[55].mxu0 }
 0x530   :  { %v2040_v11 = vmul.f32 -1.442695, %v1183_v33 }
 0x531   :  { %2587 = vpow2.f32 %v2039_v38 }
 0x532   :  { %2589 = vpow2.f32 %v2040_v11 }
 0x53b   :  { %v2588_v1 = vpop.eup %2587 }
 0x53c   :  { %v1180_v62 = vadd.f32 1.0, %v2588_v1  ;;  %v2590_v24 = vpop.eup %2589 }
 0x53d   :  { %v1187_v4 = vadd.f32 1.0, %v2590_v24 }
 0x53e   :  { %2591 = vrcp.f32 %v1180_v62 }
 0x53f   :  { %2593 = vrcp.f32 %v1187_v4  ;;  %v3369_v4 = vld [vmem:[#allocation8] ss:$12 sps:$4 sm:$0xff]  }
 0x548   :  { %v2592_v17 = vpop.eup %2591 }
 0x549   :  { %v1191_v13 = vmul.f32 %v2592_v17, %v1190_v0  ;;  %v2594_v35 = vpop.eup %2593  ;;  %v3372_v0 = vld [vmem:[#allocation8 + $0x8] ss:$12 sps:$4 sm:$0xff]   ;;  %v3382_v17 = vld [vmem:[#allocation8 + $0x18] ss:$12 sps:$4 sm:$0xff]  }
 0x54a   :  { %v1194_v40 = vsub.f32 1.0, %v2594_v35  ;;  %v1196_v22 = vmul.f32 %v2594_v35, %v3277_v27  ;;  %v3392_v35 = vld [vmem:[#allocation8 + $0x30] ss:$12 sps:$4 sm:$0xff]  }
 0x54b   :  { %v1192_v25 = vadd.f32 %v1191_v13, %v3118_v19  ;;  %v3385_v13 = vld [vmem:[#allocation8 + $0x20] ss:$12 sps:$4 sm:$0xff]  }
 0x54d   :  { %2595 = vtanh.f32 %v1192_v25  ;;  %v3388_v25 = vld [vmem:[#allocation8 + $0x34] ss:$12 sps:$4 sm:$0xff]  }
 0x557   :  { %v2596_v51 = vpop.eup %2595 }
 0x558   :  { %v1195_v57 = vmul.f32 %v2596_v51, %v1194_v40  ;;  %v3396_v40 = vld [vmem:[#allocation8 + $0x4c] ss:$12 sps:$4 sm:$0xff]  }
 0x55a   :  { %v3321_v37 = vadd.f32 %v1196_v22, %v1195_v57 }
 0x55c   :  { %v1201_v6 = vpack.c.bf16 %v3321_v37, %v3321_v37 }
 0x55e   :  { %1235 = vmatmul.mubr.bf16.vlgmr.msra.gmra.mrb[36].mxu1 %v1201_v6  ;;  %2344 = vmatmul.mubr.bf16.vlgmr.msra.gmra.mrb[56].mxu0 %v1201_v6 }
 0x55f   :  { %1310 = vmatpush1.bf16.msra.mxu1 %v2946_v43  ;;  %2348 = vmatpush3.bf16.msra.mxu0 %v2950_v46 }
 0x560   :  { %1311 = vmatprep.subr.bf16.mxu1 %v2948_v45  ;;  %2349 = vmatprep.subr.bf16.mxu0 %v3664_v41 }
 0x561   :  { %1341 = vmatprep.mubr.bf16.mxu1 %v3665_v44  ;;  %2363 = vmatprep.mubr.msk.bf16.mxu0 %vm2782_vm0, %v3664_v41 }
 0x563   :  { %1312 = vmatpush1.bf16.msra.mxu1 %v2953_v48  ;;  %2350 = vmatpush3.bf16.msra.mxu0 %v2962_v52 }
 0x564   :  { %1313 = vmatprep.subr.bf16.mxu1 %v2959_v50  ;;  %2351 = vmatprep.subr.bf16.mxu0 %v3664_v41 }
 0x567   :  { %1314 = vmatpush1.bf16.msra.mxu1 %v2968_v56  ;;  %2352 = vmatpush3.bf16.msra.mxu0 %v2974_v59 }
 0x568   :  { %1315 = vmatprep.subr.bf16.mxu1 %v2971_v58  ;;  %2353 = vmatprep.subr.bf16.mxu0 %v3664_v41 }
 0x56b   :  { %1316 = vmatpush1.bf16.msra.mxu1 %v2978_v61  ;;  %2354 = vmatpush3.bf16.msra.mxu0 %v2996_v8 }
 0x56c   :  { %1317 = vmatprep.subr.bf16.mxu1 %v2983_v63  ;;  %2355 = vmatprep.subr.bf16.mxu0 %v3664_v41 }
 0x56f   :  { %1318 = vmatpush1.bf16.msra.mxu1 %v2990_v5  ;;  %2356 = vmatpush3.bf16.msra.mxu0 %v3008_v14 }
 0x570   :  { %1319 = vmatprep.subr.bf16.mxu1 %v2994_v7  ;;  %2357 = vmatprep.subr.bf16.mxu0 %v3664_v41 }
 0x573   :  { %1320 = vmatpush1.bf16.msra.mxu1 %v3000_v10  ;;  %2358 = vmatpush3.bf16.msra.mxu0 %v3020_v21 }
 0x574   :  { %1321 = vmatprep.subr.bf16.mxu1 %v3005_v12  ;;  %2359 = vmatprep.subr.bf16.mxu0 %v3664_v41 }
 0x577   :  { %1322 = vmatpush1.bf16.msra.mxu1 %v3014_v18  ;;  %2360 = vmatpush3.bf16.msra.mxu0 %v3035_v29 }
 0x578   :  { %1323 = vmatprep.subr.bf16.mxu1 %v3017_v20  ;;  %2361 = vmatprep.subr.bf16.mxu0 %v3664_v41 }
 0x57b   :  { %1324 = vmatpush1.bf16.msra.mxu1 %v3024_v23  ;;  %2362 = vmatpush3.bf16.msra.mxu0 %v3040_v31 }
 0x57c   :  { %1416 = vmatprep.subr.bf16.mxu1 %v2934_v34  ;;  %2367 = vmatprep.subr.bf16.mxu0 %v3664_v41 }
 0x631   :  { %v1236_v43 = vpop.f32.mrb[36].mxu1  ;;  %v1277_v45 = vpop.f32.mrb[56].mxu0 }
 0x632   :  { %v1283_v46 = vadd.f32 %v1236_v43, %v3124_v28  ;;  %v1238_v48 = vpop.f32.mrb[37].mxu1  ;;  %v2345_v50 = vpop.f32.mrb[57].mxu0  ;;  %v1297_v32 = vadd.f32 %v3184_v42, %v1277_v45 }
 0x633   :  { %v1290_v52 = vadd.f32 %v1238_v48, %v3130_v36  ;;  %v1240_v56 = vpop.f32.mrb[38].mxu1  ;;  %v1280_v58 = vpop.f32.mrb[58].mxu0 }
 0x634   :  { %v2041_v19 = vmul.f32 -1.442695, %v1283_v46  ;;  %v1241_v27 = vpop.f32.mrb[39].mxu1  ;;  %v2346_v47 = vpop.f32.mrb[59].mxu0  ;;  %v3448_v56 = vld [vmem:[#allocation8 + $0x48] ss:$12 sps:$4 sm:$0xff]  }
 0x635   :  { %v2042_v2 = vmul.f32 -1.442695, %v1290_v52  ;;  %v3451_v58 = vld [vmem:[#allocation8 + $0x50] ss:$12 sps:$4 sm:$0xff]   ;;  %v3458_v27 = vld [vmem:[#allocation8 + $0x60] ss:$12 sps:$4 sm:$0xff]  }
 0x636   :  { %2597 = vpow2.f32 %v2041_v19  ;;  %v3454_v19 = vld [vmem:[#allocation8 + $0x64] ss:$12 sps:$4 sm:$0xff]   ;;  %v3461_v47 = vld [vmem:[#allocation8 + $0x68] ss:$12 sps:$4 sm:$0xff]  }
 0x637   :  { %2599 = vpow2.f32 %v2042_v2  ;;  %v3464_v2 = vld [vmem:[#allocation8 + $0x7c] ss:$12 sps:$4 sm:$0xff]  }
 0x640   :  { %v2598_v54 = vpop.eup %2597 }
 0x641   :  { %v1287_v34 = vadd.f32 1.0, %v2598_v54  ;;  %v2600_v15 = vpop.eup %2599  ;;  %v3468_v54 = vld [vmem:[#allocation8 + $0x78] ss:$12 sps:$4 sm:$0xff]  }
 0x642   :  { %v1294_v33 = vadd.f32 1.0, %v2600_v15  ;;  %v3474_v15 = vld [vmem:[#allocation8 + $0x94] ss:$12 sps:$4 sm:$0xff]  }
 0x643   :  { %2601 = vrcp.f32 %v1287_v34  ;;  %v3471_v34 = vld [vmem:[#allocation8 + $0x80] ss:$12 sps:$4 sm:$0xff]  }
 0x644   :  { %2603 = vrcp.f32 %v1294_v33  ;;  %v3478_v33 = vld [vmem:[#allocation8 + $0x90] ss:$12 sps:$4 sm:$0xff]  }
 0x64d   :  { %v2602_v28 = vpop.eup %2601 }
 0x64e   :  { %v1298_v26 = vmul.f32 %v2602_v28, %v1297_v32  ;;  %v2604_v38 = vpop.eup %2603  ;;  %v3481_v32 = vld [vmem:[#allocation8 + $0x98] ss:$12 sps:$4 sm:$0xff]  }
 0x64f   :  { %v1301_v53 = vsub.f32 1.0, %v2604_v38  ;;  %v1303_v1 = vmul.f32 %v2604_v38, %v3321_v37  ;;  %v3484_v28 = vld [vmem:[#allocation8 + $0xac] ss:$12 sps:$4 sm:$0xff]  }
 0x650   :  { %v1299_v36 = vadd.f32 %v1298_v26, %v3127_v30  ;;  %v3375_v30 = vld [vmem:[#allocation8 + $0x1c] ss:$12 sps:$4 sm:$0xff]  }
 0x651   :  { %v3488_v26 = vld [vmem:[#allocation8 + $0xa8] ss:$12 sps:$4 sm:$0xff]  }
 0x652   :  { %2605 = vtanh.f32 %v1299_v36  ;;  %v3491_v36 = vld [vmem:[#allocation8 + $0xb0] ss:$12 sps:$4 sm:$0xff]  }
 0x65c   :  { %v2606_v55 = vpop.eup %2605 }
 0x65d   :  { %v1302_v11 = vmul.f32 %v2606_v55, %v1301_v53 }
 0x65f   :  { %v3365_v62 = vadd.f32 %v1303_v1, %v1302_v11 }
 0x661   :  { %v1308_v24 = vpack.c.bf16 %v3365_v62, %v3365_v62 }
 0x663   :  { %1342 = vmatmul.mubr.bf16.vlgmr.msra.gmra.mrb[40].mxu1 %v1308_v24  ;;  %2364 = vmatmul.mubr.bf16.vlgmr.msra.gmra.mrb[60].mxu0 %v1308_v24 }
 0x664   :  { %1417 = vmatpush1.bf16.msra.mxu1 %v3369_v4  ;;  %2368 = vmatpush3.bf16.msra.mxu0 %v3372_v0 }
 0x665   :  { %1418 = vmatprep.subr.bf16.mxu1 %v3375_v30  ;;  %2369 = vmatprep.subr.bf16.mxu0 %v3664_v41 }
 0x666   :  { %1448 = vmatprep.mubr.bf16.mxu1 %v3665_v44  ;;  %2383 = vmatprep.mubr.msk.bf16.mxu0 %vm2782_vm0, %v3664_v41 }
 0x668   :  { %1419 = vmatpush1.bf16.msra.mxu1 %v3382_v17  ;;  %2370 = vmatpush3.bf16.msra.mxu0 %v3385_v13 }
 0x669   :  { %1420 = vmatprep.subr.bf16.mxu1 %v3388_v25  ;;  %2371 = vmatprep.subr.bf16.mxu0 %v3664_v41 }
 0x66c   :  { %1421 = vmatpush1.bf16.msra.mxu1 %v3392_v35  ;;  %2372 = vmatpush3.bf16.msra.mxu0 %v2974_v59  ;;  %v3418_v59 = vld [vmem:[#allocation8 + $0x4] ss:$12 sps:$4 sm:$0xff]  }
 0x66d   :  { %1422 = vmatprep.subr.bf16.mxu1 %v3396_v40  ;;  %2373 = vmatprep.subr.bf16.mxu0 %v3664_v41 }
 0x670   :  { %1423 = vmatpush1.bf16.msra.mxu1 %v2978_v61  ;;  %2374 = vmatpush3.bf16.msra.mxu0 %v2996_v8 }
 0x671   :  { %1424 = vmatprep.subr.bf16.mxu1 %v2983_v63  ;;  %2375 = vmatprep.subr.bf16.mxu0 %v3664_v41 }
 0x674   :  { %1425 = vmatpush1.bf16.msra.mxu1 %v2990_v5  ;;  %2376 = vmatpush3.bf16.msra.mxu0 %v3008_v14 }
 0x675   :  { %1426 = vmatprep.subr.bf16.mxu1 %v2994_v7  ;;  %2377 = vmatprep.subr.bf16.mxu0 %v3664_v41 }
 0x678   :  { %1427 = vmatpush1.bf16.msra.mxu1 %v3000_v10  ;;  %2378 = vmatpush3.bf16.msra.mxu0 %v3020_v21 }
 0x679   :  { %1428 = vmatprep.subr.bf16.mxu1 %v3005_v12  ;;  %2379 = vmatprep.subr.bf16.mxu0 %v3664_v41 }
 0x67c   :  { %1429 = vmatpush1.bf16.msra.mxu1 %v3014_v18  ;;  %2380 = vmatpush3.bf16.msra.mxu0 %v3035_v29 }
 0x67d   :  { %1430 = vmatprep.subr.bf16.mxu1 %v3017_v20  ;;  %2381 = vmatprep.subr.bf16.mxu0 %v3664_v41 }
 0x680   :  { %1431 = vmatpush1.bf16.msra.mxu1 %v3024_v23  ;;  %2382 = vmatpush3.bf16.msra.mxu0 %v3040_v31 }
 0x681   :  { %1523 = vmatprep.subr.bf16.mxu1 %v3418_v59  ;;  %2387 = vmatprep.subr.bf16.mxu0 %v3664_v41 }
 0x736   :  { %v1343_v61 = vpop.f32.mrb[40].mxu1  ;;  %v1384_v63 = vpop.f32.mrb[60].mxu0 }
 0x737   :  { %v1390_v5 = vadd.f32 %v1343_v61, %v3133_v39  ;;  %v1345_v7 = vpop.f32.mrb[41].mxu1  ;;  %v2365_v8 = vpop.f32.mrb[61].mxu0  ;;  %v1404_v22 = vadd.f32 %v3184_v42, %v1384_v63 }
 0x738   :  { %v1397_v10 = vadd.f32 %v1345_v7, %v3139_v60  ;;  %v1347_v12 = vpop.f32.mrb[42].mxu1  ;;  %v1387_v14 = vpop.f32.mrb[62].mxu0 }
 0x739   :  { %v2043_v18 = vmul.f32 -1.442695, %v1390_v5  ;;  %v1348_v20 = vpop.f32.mrb[43].mxu1  ;;  %v2366_v21 = vpop.f32.mrb[63].mxu0 }
 0x73a   :  { %v2044_v23 = vmul.f32 -1.442695, %v1397_v10 }
 0x73b   :  { %2607 = vpow2.f32 %v2043_v18 }
 0x73c   :  { %2609 = vpow2.f32 %v2044_v23 }
 0x745   :  { %v2608_v29 = vpop.eup %2607 }
 0x746   :  { %v1394_v31 = vadd.f32 1.0, %v2608_v29  ;;  %v2610_v51 = vpop.eup %2609 }
 0x747   :  { %v1401_v57 = vadd.f32 1.0, %v2610_v51 }
 0x748   :  { %2611 = vrcp.f32 %v1394_v31 }
 0x749   :  { %2613 = vrcp.f32 %v1401_v57 }
 0x752   :  { %v2612_v39 = vpop.eup %2611 }
 0x753   :  { %v1405_v37 = vmul.f32 %v2612_v39, %v1404_v22  ;;  %v2614_v6 = vpop.eup %2613 }
 0x754   :  { %v1408_v43 = vsub.f32 1.0, %v2614_v6  ;;  %v1410_v48 = vmul.f32 %v2614_v6, %v3365_v62 }
 0x755   :  { %v1406_v60 = vadd.f32 %v1405_v37, %v3136_v49  ;;  %v3443_v49 = vld [vmem:[#allocation8 + $0x38] ss:$12 sps:$4 sm:$0xff]  }
 0x757   :  { %2615 = vtanh.f32 %v1406_v60  ;;  %v3666_v60 = vld [vmem:[#allocation13_spill] sm:$0xff] }
 0x761   :  { %v2616_v45 = vpop.eup %2615 }
 0x762   :  { %v1409_v46 = vmul.f32 %v2616_v45, %v1408_v43 }
 0x764   :  { %v3427_v50 = vadd.f32 %v1410_v48, %v1409_v46  ;;  %v3667_v46 = vld [vmem:[#allocation15_spill] sm:$0xff] }
 0x766   :  { %v1415_v52 = vpack.c.bf16 %v3427_v50, %v3427_v50 }
 0x768   :  { %1449 = vmatmul.mubr.bf16.vlgmr.msra.gmra.mrb[44].mxu1 %v1415_v52  ;;  %2384 = vmatmul.mubr.bf16.vlgmr.msra.gmra.mrb[64].mxu0 %v1415_v52 }
 0x769   :  { %1524 = vmatpush1.bf16.msra.mxu1 %v3369_v4  ;;  %2388 = vmatpush3.bf16.msra.mxu0 %v3372_v0 }
 0x76a   :  { %1525 = vmatprep.subr.bf16.mxu1 %v3375_v30  ;;  %2389 = vmatprep.subr.bf16.mxu0 %v3664_v41 }
 0x76b   :  { %1555 = vmatprep.mubr.bf16.mxu1 %v3665_v44  ;;  %2403 = vmatprep.mubr.msk.bf16.mxu0 %vm2782_vm0, %v3664_v41 }
 0x76d   :  { %1526 = vmatpush1.bf16.msra.mxu1 %v3382_v17  ;;  %2390 = vmatpush3.bf16.msra.mxu0 %v3385_v13 }
 0x76e   :  { %1527 = vmatprep.subr.bf16.mxu1 %v3388_v25  ;;  %2391 = vmatprep.subr.bf16.mxu0 %v3664_v41 }
 0x771   :  { %1528 = vmatpush1.bf16.msra.mxu1 %v3392_v35  ;;  %2392 = vmatpush3.bf16.msra.mxu0 %v3443_v49 }
 0x772   :  { %1529 = vmatprep.subr.bf16.mxu1 %v3396_v40  ;;  %2393 = vmatprep.subr.bf16.mxu0 %v3664_v41 }
 0x775   :  { %1530 = vmatpush1.bf16.msra.mxu1 %v3448_v56  ;;  %2394 = vmatpush3.bf16.msra.mxu0 %v3451_v58 }
 0x776   :  { %1531 = vmatprep.subr.bf16.mxu1 %v3454_v19  ;;  %2395 = vmatprep.subr.bf16.mxu0 %v3664_v41 }
 0x779   :  { %1532 = vmatpush1.bf16.msra.mxu1 %v3458_v27  ;;  %2396 = vmatpush3.bf16.msra.mxu0 %v3461_v47 }
 0x77a   :  { %1533 = vmatprep.subr.bf16.mxu1 %v3464_v2  ;;  %2397 = vmatprep.subr.bf16.mxu0 %v3664_v41 }
 0x77d   :  { %1534 = vmatpush1.bf16.msra.mxu1 %v3468_v54  ;;  %2398 = vmatpush3.bf16.msra.mxu0 %v3471_v34 }
 0x77e   :  { %1535 = vmatprep.subr.bf16.mxu1 %v3474_v15  ;;  %2399 = vmatprep.subr.bf16.mxu0 %v3664_v41 }
 0x781   :  { %1536 = vmatpush1.bf16.msra.mxu1 %v3478_v33  ;;  %2400 = vmatpush3.bf16.msra.mxu0 %v3481_v32 }
 0x782   :  { %1537 = vmatprep.subr.bf16.mxu1 %v3484_v28  ;;  %2401 = vmatprep.subr.bf16.mxu0 %v3664_v41 }
 0x785   :  { %1538 = vmatpush1.bf16.msra.mxu1 %v3488_v26  ;;  %2402 = vmatpush3.bf16.msra.mxu0 %v3491_v36 }
 0x786   :  { %1630 = vmatprep.subr.bf16.mxu1 %v3418_v59  ;;  %2407 = vmatprep.subr.bf16.mxu0 %v3664_v41 }
 0x83b   :  { %v1450_v38 = vpop.f32.mrb[44].mxu1  ;;  %v1491_v53 = vpop.f32.mrb[64].mxu0 }
 0x83c   :  { %v1497_v55 = vadd.f32 %v1450_v38, %v3142_v3  ;;  %v1452_v11 = vpop.f32.mrb[45].mxu1  ;;  %v2385_v1 = vpop.f32.mrb[65].mxu0  ;;  %v1511_v20 = vadd.f32 %v3184_v42, %v1491_v53 }
 0x83d   :  { %v1504_v62 = vadd.f32 %v1452_v11, %v3148_v16  ;;  %v1454_v24 = vpop.f32.mrb[46].mxu1  ;;  %v1494_v61 = vpop.f32.mrb[66].mxu0 }
 0x83e   :  { %v2045_v63 = vmul.f32 -1.442695, %v1497_v55  ;;  %v1455_v5 = vpop.f32.mrb[47].mxu1  ;;  %v2386_v7 = vpop.f32.mrb[67].mxu0 }
 0x83f   :  { %v2046_v8 = vmul.f32 -1.442695, %v1504_v62  ;;  %v3668_v7 = vld [vmem:[#allocation14_spill] sm:$0xff] }
 0x840   :  { %2617 = vpow2.f32 %v2045_v63 }
 0x841   :  { %2619 = vpow2.f32 %v2046_v8 }
 0x84a   :  { %v2618_v10 = vpop.eup %2617 }
 0x84b   :  { %v1501_v12 = vadd.f32 1.0, %v2618_v10  ;;  %v2620_v14 = vpop.eup %2619 }
 0x84c   :  { %v1508_v18 = vadd.f32 1.0, %v2620_v14 }
 0x84d   :  { %2621 = vrcp.f32 %v1501_v12 }
 0x84e   :  { %2623 = vrcp.f32 %v1508_v18 }
 0x857   :  { %v2622_v3 = vpop.eup %2621 }
 0x858   :  { %v1512_v21 = vmul.f32 %v2622_v3, %v1511_v20  ;;  %v2624_v23 = vpop.eup %2623 }
 0x859   :  { %v1515_v29 = vsub.f32 1.0, %v2624_v23  ;;  %v1517_v57 = vmul.f32 %v2624_v23, %v3427_v50 }
 0x85a   :  { %v1513_v16 = vadd.f32 %v1512_v21, %v3145_v9 }
 0x85c   :  { %2625 = vtanh.f32 %v1513_v16 }
 0x866   :  { %v2626_v31 = vpop.eup %2625 }
 0x867   :  { %v1516_v51 = vmul.f32 %v2626_v31, %v1515_v29 }
 0x869   :  { %v3501_v22 = vadd.f32 %v1517_v57, %v1516_v51 }
 0x86b   :  { %v1522_v39 = vpack.c.bf16 %v3501_v22, %v3501_v22 }
 0x86d   :  { %1556 = vmatmul.mubr.bf16.vlgmr.msra.gmra.mrb[48].mxu1 %v1522_v39  ;;  %2404 = vmatmul.mubr.bf16.vlgmr.msra.gmra.mrb[68].mxu0 %v1522_v39  ;;  %v2550_v39 = vld [vmem:[%s3648_s7 + $0x8] sm:$0xff]  }
 0x86e   :  { %1631 = vmatpush1.bf16.msra.mxu1 %v3369_v4  ;;  %2408 = vmatpush3.bf16.msra.mxu0 %v3372_v0 }
 0x86f   :  { %1632 = vmatprep.subr.bf16.mxu1 %v3375_v30  ;;  %2409 = vmatprep.subr.bf16.mxu0 %v3664_v41 }
 0x870   :  { %1662 = vmatprep.mubr.bf16.mxu1 %v3665_v44  ;;  %2423 = vmatprep.mubr.msk.bf16.mxu0 %vm2782_vm0, %v3664_v41 }
 0x872   :  { %1633 = vmatpush1.bf16.msra.mxu1 %v3382_v17  ;;  %2410 = vmatpush3.bf16.msra.mxu0 %v3385_v13 }
 0x873   :  { %1634 = vmatprep.subr.bf16.mxu1 %v3388_v25  ;;  %2411 = vmatprep.subr.bf16.mxu0 %v3664_v41 }
 0x876   :  { %1635 = vmatpush1.bf16.msra.mxu1 %v3392_v35  ;;  %2412 = vmatpush3.bf16.msra.mxu0 %v3443_v49 }
 0x877   :  { %1636 = vmatprep.subr.bf16.mxu1 %v3396_v40  ;;  %2413 = vmatprep.subr.bf16.mxu0 %v3664_v41 }
 0x87a   :  { %1637 = vmatpush1.bf16.msra.mxu1 %v3448_v56  ;;  %2414 = vmatpush3.bf16.msra.mxu0 %v3451_v58 }
 0x87b   :  { %1638 = vmatprep.subr.bf16.mxu1 %v3454_v19  ;;  %2415 = vmatprep.subr.bf16.mxu0 %v3664_v41 }
 0x87e   :  { %1639 = vmatpush1.bf16.msra.mxu1 %v3458_v27  ;;  %2416 = vmatpush3.bf16.msra.mxu0 %v3461_v47 }
 0x87f   :  { %1640 = vmatprep.subr.bf16.mxu1 %v3464_v2  ;;  %2417 = vmatprep.subr.bf16.mxu0 %v3664_v41 }
 0x882   :  { %1641 = vmatpush1.bf16.msra.mxu1 %v3468_v54  ;;  %2418 = vmatpush3.bf16.msra.mxu0 %v3471_v34 }
 0x883   :  { %1642 = vmatprep.subr.bf16.mxu1 %v3474_v15  ;;  %2419 = vmatprep.subr.bf16.mxu0 %v3664_v41 }
 0x886   :  { %1643 = vmatpush1.bf16.msra.mxu1 %v3478_v33  ;;  %2420 = vmatpush3.bf16.msra.mxu0 %v3481_v32 }
 0x887   :  { %1644 = vmatprep.subr.bf16.mxu1 %v3484_v28  ;;  %2421 = vmatprep.subr.bf16.mxu0 %v3664_v41 }
 0x88a   :  { %1645 = vmatpush1.bf16.msra.mxu1 %v3488_v26  ;;  %2422 = vmatpush3.bf16.msra.mxu0 %v3491_v36 }
 0x88b   :  { %1737 = vmatprep.subr.bf16.mxu1 %v3418_v59  ;;  %2427 = vmatprep.subr.bf16.mxu0 %v3664_v41 }
 0x940   :  { %v1557_v9 = vpop.f32.mrb[48].mxu1  ;;  %v1598_v37 = vpop.f32.mrb[68].mxu0 }
 0x941   :  { %v1604_v6 = vadd.f32 %v1557_v9, %v3666_v60  ;;  %v1559_v43 = vpop.f32.mrb[49].mxu1  ;;  %v2405_v45 = vpop.f32.mrb[69].mxu0  ;;  %v1618_v61 = vadd.f32 %v3184_v42, %v1598_v37  ;;  %v2551_v9 = vld [vmem:[%s3648_s7 + $0x10] sm:$0xff]   ;;  %v2552_v37 = vld [vmem:[%s3648_s7 + $0x18] sm:$0xff]   ;;  %v2553_v60 = vld [vmem:[%s3648_s7 + $0x20] sm:$0xff]  }
 0x942   :  { %v1611_v48 = vadd.f32 %v1559_v43, %v3667_v46  ;;  %v1561_v50 = vpop.f32.mrb[50].mxu1  ;;  %v1601_v52 = vpop.f32.mrb[70].mxu0  ;;  %v2555_v43 = vld [vmem:[%s3648_s7 + $0x30] sm:$0xff]   ;;  %v2556_v45 = vld [vmem:[%s3648_s7 + $0x38] sm:$0xff]  }
 0x943   :  { %v2047_v38 = vmul.f32 -1.442695, %v1604_v6  ;;  %v1562_v53 = vpop.f32.mrb[51].mxu1  ;;  %v2406_v55 = vpop.f32.mrb[71].mxu0  ;;  %v2554_v6 = vld [vmem:[%s3648_s7 + $0x28] sm:$0xff]  }
 0x944   :  { %v2048_v11 = vmul.f32 -1.442695, %v1611_v48  ;;  %v3672_v50 = vld [vmem:[#allocation19_spill] sm:$0xff]  ;;  %v3673_v55 = vld [vmem:[#allocation21_spill] sm:$0xff] }
 0x945   :  { %2627 = vpow2.f32 %v2047_v38 }
 0x946   :  { %2629 = vpow2.f32 %v2048_v11 }
 0x94f   :  { %v2628_v1 = vpop.eup %2627 }
 0x950   :  { %v1608_v59 = vadd.f32 1.0, %v2628_v1  ;;  %v2630_v62 = vpop.eup %2629 }
 0x951   :  { %v1615_v24 = vadd.f32 1.0, %v2630_v62 }
 0x952   :  { %2631 = vrcp.f32 %v1608_v59 }
 0x953   :  { %2633 = vrcp.f32 %v1615_v24 }
 0x95c   :  { %v2632_v63 = vpop.eup %2631 }
 0x95d   :  { %v1619_v5 = vmul.f32 %v2632_v63, %v1618_v61  ;;  %v2634_v10 = vpop.eup %2633 }
 0x95e   :  { %v1622_v12 = vsub.f32 1.0, %v2634_v10  ;;  %v1624_v20 = vmul.f32 %v2634_v10, %v3501_v22  ;;  %v2549_v22 = vld [vmem:[%s3648_s7] sm:$0xff]  }
 0x95f   :  { %v1620_v8 = vadd.f32 %v1619_v5, %v3668_v7 }
 0x961   :  { %2635 = vtanh.f32 %v1620_v8 }
 0x96b   :  { %v2636_v14 = vpop.eup %2635 }
 0x96c   :  { %v1623_v18 = vmul.f32 %v2636_v14, %v1622_v12 }
 0x96e   :  { %v3545_v3 = vadd.f32 %v1624_v20, %v1623_v18  ;;  %v3674_v18 = vld [vmem:[#allocation20_spill] sm:$0xff] }
 0x970   :  { %v1629_v21 = vpack.c.bf16 %v3545_v3, %v3545_v3 }
 0x972   :  { %1663 = vmatmul.mubr.bf16.vlgmr.msra.gmra.mrb[52].mxu1 %v1629_v21  ;;  %2424 = vmatmul.mubr.bf16.vlgmr.msra.gmra.mrb[72].mxu0 %v1629_v21 }
 0x973   :  { %1738 = vmatpush1.bf16.msra.mxu1 %v3369_v4  ;;  %2428 = vmatpush3.bf16.msra.mxu0 %v3372_v0  ;;  %v3669_v4 = vld [vmem:[#allocation16_spill] sm:$0xff] }
 0x974   :  { %1739 = vmatprep.subr.bf16.mxu1 %v3375_v30  ;;  %2429 = vmatprep.subr.bf16.mxu0 %v3664_v41 }
 0x975   :  { %1769 = vmatprep.mubr.bf16.mxu1 %v3665_v44  ;;  %2443 = vmatprep.mubr.msk.bf16.mxu0 %vm2782_vm0, %v3664_v41 }
 0x977   :  { %1740 = vmatpush1.bf16.msra.mxu1 %v3382_v17  ;;  %2430 = vmatpush3.bf16.msra.mxu0 %v3385_v13  ;;  %v3670_v13 = vld [vmem:[#allocation18_spill] sm:$0xff] }
 0x978   :  { %1741 = vmatprep.subr.bf16.mxu1 %v3388_v25  ;;  %2431 = vmatprep.subr.bf16.mxu0 %v3664_v41 }
 0x97b   :  { %1742 = vmatpush1.bf16.msra.mxu1 %v3392_v35  ;;  %2432 = vmatpush3.bf16.msra.mxu0 %v3443_v49 }
 0x97c   :  { %1743 = vmatprep.subr.bf16.mxu1 %v3396_v40  ;;  %2433 = vmatprep.subr.bf16.mxu0 %v3664_v41 }
 0x97f   :  { %1744 = vmatpush1.bf16.msra.mxu1 %v3448_v56  ;;  %2434 = vmatpush3.bf16.msra.mxu0 %v3451_v58 }
 0x980   :  { %1745 = vmatprep.subr.bf16.mxu1 %v3454_v19  ;;  %2435 = vmatprep.subr.bf16.mxu0 %v3664_v41 }
 0x983   :  { %1746 = vmatpush1.bf16.msra.mxu1 %v3458_v27  ;;  %2436 = vmatpush3.bf16.msra.mxu0 %v3461_v47 }
 0x984   :  { %1747 = vmatprep.subr.bf16.mxu1 %v3464_v2  ;;  %2437 = vmatprep.subr.bf16.mxu0 %v3664_v41 }
 0x987   :  { %1748 = vmatpush1.bf16.msra.mxu1 %v3468_v54  ;;  %2438 = vmatpush3.bf16.msra.mxu0 %v3471_v34  ;;  %v2681_v34 = vld [vmem:[%s3647_s6] ss:$0 sm:$0xff] }
 0x988   :  { %1749 = vmatprep.subr.bf16.mxu1 %v3474_v15  ;;  %2439 = vmatprep.subr.bf16.mxu0 %v3664_v41 }
 0x98b   :  { %1750 = vmatpush1.bf16.msra.mxu1 %v3478_v33  ;;  %2440 = vmatpush3.bf16.msra.mxu0 %v3481_v32 }
 0x98c   :  { %1751 = vmatprep.subr.bf16.mxu1 %v3484_v28  ;;  %2441 = vmatprep.subr.bf16.mxu0 %v3664_v41  ;;  %v3671_v28 = vld [vmem:[#allocation17_spill] sm:$0xff] }
 0x98f   :  { %1752 = vmatpush1.bf16.msra.mxu1 %v3488_v26  ;;  %2442 = vmatpush3.bf16.msra.mxu0 %v3491_v36 }
 0x990   :  { %2447 = vmatprep.subr.bf16.mxu1 %v3664_v41 }
 0xa45   :  { %v1664_v42 = vpop.f32.mrb[52].mxu1  ;;  %v1705_v44 = vpop.f32.mrb[72].mxu0 }
 0xa46   :  { %v1711_v0 = vadd.f32 %v1664_v42, %v3669_v4  ;;  %v1666_v30 = vpop.f32.mrb[53].mxu1  ;;  %v2425_v17 = vpop.f32.mrb[73].mxu0  ;;  %v1725_v15 = vadd.f32 %v2681_v34, %v1705_v44 }
 0xa47   :  { %v1718_v25 = vadd.f32 %v1666_v30, %v3670_v13  ;;  %v1668_v35 = vpop.f32.mrb[54].mxu1  ;;  %v1708_v40 = vpop.f32.mrb[74].mxu0  ;;  %v2053_v17 = vld [vmem:[%s3649_s8] ss:$0 sm:$0xff] }
 0xa48   :  { %v2049_v49 = vmul.f32 -1.442695, %v1711_v0  ;;  %v1669_v56 = vpop.f32.mrb[55].mxu1  ;;  %v2426_v58 = vpop.f32.mrb[75].mxu0 }
 0xa49   :  { %v2050_v19 = vmul.f32 -1.442695, %v1718_v25 }
 0xa4a   :  { %2637 = vpow2.f32 %v2049_v49 }
 0xa4b   :  { %2639 = vpow2.f32 %v2050_v19 }
 0xa54   :  { %v2638_v27 = vpop.eup %2637 }
 0xa55   :  { %v1715_v47 = vadd.f32 1.0, %v2638_v27  ;;  %v2640_v2 = vpop.eup %2639 }
 0xa56   :  { %v1722_v54 = vadd.f32 1.0, %v2640_v2 }
 0xa57   :  { %2641 = vrcp.f32 %v1715_v47 }
 0xa58   :  { %2643 = vrcp.f32 %v1722_v54 }
 0xa61   :  { %v2642_v33 = vpop.eup %2641 }
 0xa62   :  { %v1726_v32 = vmul.f32 %v2642_v33, %v1725_v15  ;;  %v2644_v36 = vpop.eup %2643 }
 0xa63   :  { %v1729_v16 = vsub.f32 1.0, %v2644_v36  ;;  %v1731_v31 = vmul.f32 %v2644_v36, %v3545_v3 }
 0xa64   :  { %v1727_v26 = vadd.f32 %v1726_v32, %v3671_v28 }
 0xa66   :  { %2645 = vtanh.f32 %v1727_v26 }
 0xa70   :  { %v2646_v23 = vpop.eup %2645 }
 0xa71   :  { %v1730_v29 = vmul.f32 %v2646_v23, %v1729_v16 }
 0xa73   :  { %v1732_v51 = vadd.f32 %v1731_v31, %v1730_v29 }
 0xa75   :  { %v1736_v57 = vpack.c.bf16 %v1732_v51, %v1732_v51 }
 0xa77   :  { %1770 = vmatmul.mubr.bf16.vlgmr.msra.gmra.mrb[56].mxu1 %v1736_v57  ;;  %2444 = vmatmul.mubr.bf16.vlgmr.msra.gmra.mrb[76].mxu0 %v1736_v57 }
 0xa78   :  { %2463 = vmatprep.mubr.msk.bf16.mxu1 %vm2782_vm0, %v3664_v41  ;;  %2448 = vmatpush3.bf16.msra.mxu1 %v2549_v22 }
 0xa79   :  { %2449 = vmatprep.subr.bf16.mxu1 %v3664_v41 }
 0xa7c   :  { %2450 = vmatpush3.bf16.msra.mxu1 %v2550_v39 }
 0xa7d   :  { %2451 = vmatprep.subr.bf16.mxu1 %v3664_v41 }
 0xa80   :  { %2452 = vmatpush3.bf16.msra.mxu1 %v2551_v9 }
 0xa81   :  { %2453 = vmatprep.subr.bf16.mxu1 %v3664_v41 }
 0xa84   :  { %2454 = vmatpush3.bf16.msra.mxu1 %v2552_v37 }
 0xa85   :  { %2455 = vmatprep.subr.bf16.mxu1 %v3664_v41 }
 0xa88   :  { %2456 = vmatpush3.bf16.msra.mxu1 %v2553_v60 }
 0xa89   :  { %2457 = vmatprep.subr.bf16.mxu1 %v3664_v41 }
 0xa8c   :  { %2458 = vmatpush3.bf16.msra.mxu1 %v2554_v6 }
 0xa8d   :  { %2459 = vmatprep.subr.bf16.mxu1 %v3664_v41 }
 0xa90   :  { %2460 = vmatpush3.bf16.msra.mxu1 %v2555_v43 }
 0xa91   :  { %2461 = vmatprep.subr.bf16.mxu1 %v3664_v41 }
 0xa94   :  { %2462 = vmatpush3.bf16.msra.mxu1 %v2556_v45 }
 0xb4a   :  { %v1771_v46 = vpop.f32.mrb[56].mxu1  ;;  %v1812_v48 = vpop.f32.mrb[76].mxu0 }
 0xb4b   :  { %v1818_v52 = vadd.f32 %v1771_v46, %v3672_v50  ;;  %v1773_v38 = vpop.f32.mrb[57].mxu1  ;;  %v2445_v53 = vpop.f32.mrb[77].mxu0  ;;  %v1832_v10 = vadd.f32 %v2681_v34, %v1812_v48 }
 0xb4c   :  { %v1825_v11 = vadd.f32 %v1773_v38, %v3673_v55  ;;  %v1775_v1 = vpop.f32.mrb[58].mxu1  ;;  %v1815_v59 = vpop.f32.mrb[78].mxu0 }
 0xb4d   :  { %v2051_v62 = vmul.f32 -1.442695, %v1818_v52  ;;  %v1776_v24 = vpop.f32.mrb[59].mxu1  ;;  %v2446_v61 = vpop.f32.mrb[79].mxu0 }
 0xb4e   :  { %v2052_v63 = vmul.f32 -1.442695, %v1825_v11 }
 0xb4f   :  { %2647 = vpow2.f32 %v2051_v62 }
 0xb50   :  { %2649 = vpow2.f32 %v2052_v63 }
 0xb59   :  { %v2648_v5 = vpop.eup %2647 }
 0xb5a   :  { %v1822_v7 = vadd.f32 1.0, %v2648_v5  ;;  %v2650_v41 = vpop.eup %2649 }
 0xb5b   :  { %v1829_v8 = vadd.f32 1.0, %v2650_v41 }
 0xb5c   :  { %2651 = vrcp.f32 %v1822_v7 }
 0xb5d   :  { %2653 = vrcp.f32 %v1829_v8 }
 0xb66   :  { %v2652_v12 = vpop.eup %2651 }
 0xb67   :  { %v1833_v14 = vmul.f32 %v2652_v12, %v1832_v10  ;;  %v2654_v3 = vpop.eup %2653 }
 0xb68   :  { %v1836_v21 = vsub.f32 1.0, %v2654_v3  ;;  %v1838_v4 = vmul.f32 %v2654_v3, %v1732_v51 }
 0xb69   :  { %v1834_v20 = vadd.f32 %v1833_v14, %v3674_v18 }
 0xb6b   :  { %2655 = vtanh.f32 %v1834_v20 }
 0xb75   :  { %v2656_v42 = vpop.eup %2655 }
 0xb76   :  { %v1837_v44 = vmul.f32 %v2656_v42, %v1836_v21 }
 0xb78   :  { %v1839_v0 = vadd.f32 %v1838_v4, %v1837_v44 }
 0xb7a   :  { %v1840_v30 = vpack.c.bf16 %v1839_v0, %v1839_v0 }
 0xb7c   :  { %2464 = vmatmul.mubr.bf16.vlgmr.msra.gmra.mrb[60].mxu1 %v1840_v30 }
 0xc4f   :  { %v1946_v13 = vpop.f32.mrb[60].mxu1 }
 0xc50   :  { %v1947_v25 = vadd.f32 %v2053_v17, %v1946_v13  ;;  %v2465_v35 = vpop.f32.mrb[61].mxu1 }
 0xc51   :  { %v1949_v40 = vpop.f32.mrb[62].mxu1 }
 0xc52   :  { %1952 = vst [vmem:[#allocation9] sm:$0xff] %v1947_v25  ;;  %v2466_v49 = vpop.f32.mrb[63].mxu1 }
 0xc53   :  { %2759 = shalt.err (!%p2756_p0)
}
 0xc54   :  { %s2760_s8 = scalar_lea.hbm %s3650_s9, 128 }
 0xc55   :  { %p2761_p1 = scmp.ne.s32.totalorder %s3650_s9, %s2760_s8  ;;  %p2764_p2 = scmp.lt.u32.totalorder %s2760_s8, %s3650_s9 }
 0xc57   :  { %p2766_p3 = pnand %p2764_p2, %p2761_p1 }
 0xc59   :  { %2769 = shalt.err (!%p2766_p3)
}
 0xc5a   :  { %1962 = dma.vmem_to_hbm [thread:$0]  %s1960_s16, 128, %s3650_s9, [#allocation5]  }
 0xc5b   :  { %2774 = dma.done.wait [#allocation5], 128  }
 0xc5c   :  { %2775 = vsyncadd [#allocation5], 4294967168 }
 0xc5d   :  { %1966 = vsyncpa [#allocation4], 1 }
 0xc5e   :  { %1967 = vsyncpa [#allocation7], 1 }
 0xc5f   :  { %1968 = vsyncpa [#allocation5], 1 }

</bundles_post_ra>
